<compile_context>
chip_gen: v6e
topology: v6e:2x2x1
jax: 0.10.0
libtpu: 0.0.40
codegen_flags: <defaults>
</compile_context>

<pallas_src>
import math
from functools import partial

import jax
import jax.numpy as jnp
import numpy as np
from jax.experimental import pallas as pl
from jax.experimental.pallas import tpu as pltpu


def _vmem():
    return pl.BlockSpec(memory_space=pltpu.MemorySpace.VMEM)


# ----------------------------------------------------------------------------
# Kernel A: bilinear interpolation gather (one-hot-weight matmul on the MXU)
# ----------------------------------------------------------------------------
def _bilinear_kernel(zf_ref, x_ref, y_ref, out_ref, *, h, w, compute_dtype):
    hw = h * w
    n = x_ref.shape[1]                       # query tile size
    x = x_ref[...]
    y = y_ref[...]
    x1 = x.astype(jnp.int32)                 # trunc-toward-zero, like torch .int()
    y1 = y.astype(jnp.int32)
    x2 = jnp.clip(x1 + 1, 0, h - 1)
    y2 = jnp.clip(y1 + 1, 0, w - 1)
    x1 = jnp.clip(x1, 0, h - 1)
    y1 = jnp.clip(y1, 0, w - 1)
    dx = x - x1.astype(jnp.float32)
    dy = y - y1.astype(jnp.float32)
    w11 = (1.0 - dx) * (1.0 - dy)
    w21 = dx * (1.0 - dy)
    w12 = (1.0 - dx) * dy
    w22 = dx * dy
    # (hw, tile_n) one-hot weight matrix; coincident (clamped) corners add,
    # matching the reference formula exactly.  Only one tile is ever built.
    pos = jax.lax.broadcasted_iota(jnp.int32, (hw, n), 0)
    sel = jnp.where(pos == (x1 * w + y1), w11, 0.0)
    sel = sel + jnp.where(pos == (x1 * w + y2), w12, 0.0)
    sel = sel + jnp.where(pos == (x2 * w + y1), w21, 0.0)
    sel = sel + jnp.where(pos == (x2 * w + y2), w22, 0.0)
    out_ref[...] = jnp.dot(zf_ref[...].astype(compute_dtype),
                           sel.astype(compute_dtype),
                           preferred_element_type=jnp.float32)


def bilinear_interpolation_pallas(Z, qx, qy, compute_dtype=jnp.float32):
    C, H, W = Z.shape
    N = qx.shape[0]
    # Lane-dense tiles of 128 queries when the query count allows it;
    # otherwise a single full block (Pallas requires tile | 128 or == extent).
    TN = 128 if (N % 128 == 0) else N
    zf = Z.reshape(C, H * W).astype(compute_dtype)
    x2d = qx.reshape(1, N).astype(jnp.float32)
    y2d = qy.reshape(1, N).astype(jnp.float32)
    out = pl.pallas_call(
        partial(_bilinear_kernel, h=H, w=W, compute_dtype=compute_dtype),
        out_shape=jax.ShapeDtypeStruct((C, N), jnp.float32),
        grid=(N // TN,),
        in_specs=[pl.BlockSpec((C, H * W), lambda i: (0, 0)),
                  pl.BlockSpec((1, TN), lambda i: (0, i)),
                  pl.BlockSpec((1, TN), lambda i: (0, i))],
        out_specs=pl.BlockSpec((C, TN), lambda i: (0, i)),
        compiler_params=pltpu.CompilerParams(
            dimension_semantics=("parallel",)),
    )(zf, x2d, y2d)
    # torch.reshape((c, N) -> (-1, c)): row-major reinterpretation, NOT a
    # transpose -- kept as a free XLA reshape between the two kernels.
    return out.reshape(-1, C)


# ----------------------------------------------------------------------------
# Kernel B: fused linear1 + linear2 + (virtual) concats + MultiheadAttention
#           + final cat([q_z, attn_out])
# ----------------------------------------------------------------------------
def _fused_kernel(zr_ref, qr_ref, q_ref, qz_ref,
                  w1t_ref, b1_ref, w2t_ref, b2_ref,
                  wq_z_ref, wq_l_ref, bq_ref,
                  wk_z_ref, wk_r_ref, bk_ref,
                  wv_z_ref, wv_r_ref, bv_ref,
                  wo_ref, bo_ref,
                  o_ref, *, num_heads, head_dim, c_q, compute_dtype):
    f32 = jnp.float32
    cd = compute_dtype

    zr = zr_ref[...]                    # (N, Ck)  interpolated features
    qr = qr_ref[...]                    # (N, 2)
    q_in = q_ref[...]                   # (L, 3)
    q_z = qz_ref[...]                   # (L, Cq)

    # linear1 / linear2: K=2 / K=3 contractions as VPU broadcast-MACs (f32).
    w1t = w1t_ref[...]                  # (2, h2)
    r_lin = (qr[:, 0:1] * w1t[0:1, :] + qr[:, 1:2] * w1t[1:2, :]
             + b1_ref[...])             # (N, h2)
    w2t = w2t_ref[...]                  # (3, h2)
    q_lin = (q_in[:, 0:1] * w2t[0:1, :] + q_in[:, 1:2] * w2t[1:2, :]
             + q_in[:, 2:3] * w2t[2:3, :] + b2_ref[...])          # (L, h2)

    zr_c = zr.astype(cd)
    rl_c = r_lin.astype(cd)
    qz_c = q_z.astype(cd)
    ql_c = q_lin.astype(cd)

    # key = cat([Zr, r_lin], -1) and query = cat([q_z, q_lin], -1) are never
    # materialised: the in-projection weights were pre-split over the concat
    # boundary, so each projection is the exact sum of two matmuls.
    scale = 1.0 / math.sqrt(head_dim)
    attn = None
    for hh in range(num_heads):         # static unroll; no activation slicing
        qh = (jnp.dot(qz_c, wq_z_ref[hh], preferred_element_type=f32)
              + jnp.dot(ql_c, wq_l_ref[hh], preferred_element_type=f32)
              + bq_ref[hh])                                        # (L, hd)
        kh = (jnp.dot(zr_c, wk_z_ref[hh], preferred_element_type=f32)
              + jnp.dot(rl_c, wk_r_ref[hh], preferred_element_type=f32)
              + bk_ref[hh])                                        # (S, hd)
        vh = (jnp.dot(zr_c, wv_z_ref[hh], preferred_element_type=f32)
              + jnp.dot(rl_c, wv_r_ref[hh], preferred_element_type=f32)
              + bv_ref[hh])                                        # (S, hd)
        s = jax.lax.dot_general((qh * scale).astype(cd), kh.astype(cd),
                                (((1,), (1,)), ((), ())),
                                preferred_element_type=f32)        # (L, S)
        s = s - jnp.max(s, axis=-1, keepdims=True)
        p = jnp.exp(s)
        p = p * pl.reciprocal(jnp.sum(p, axis=-1, keepdims=True), approx=True)
        ctx = jnp.dot(p.astype(cd), vh.astype(cd),
                      preferred_element_type=f32)                  # (L, hd)
        # out-proj of concat(heads) == sum over heads of per-head out-proj;
        # removes the head concat / relayout entirely.
        contrib = jnp.dot(ctx.astype(cd), wo_ref[hh],
                          preferred_element_type=f32)              # (L, E)
        attn = contrib if attn is None else attn + contrib
    attn = attn + bo_ref[...]

    # z = cat([q_z, attn_out], -1): two column-range stores into one block.
    o_ref[:, :c_q] = q_z
    o_ref[:, c_q:] = attn.astype(o_ref.dtype)


def fused_attention_pallas(Zr, qr, Q, q_z, prep, *, num_heads, head_dim,
                           compute_dtype=jnp.float32):
    L, c_q = q_z.shape
    E = prep["bo"].shape[1]
    args = (Zr, qr, Q, q_z,
            prep["w1t"], prep["b1"], prep["w2t"], prep["b2"],
            prep["wq_z"], prep["wq_l"], prep["bq"],
            prep["wk_z"], prep["wk_r"], prep["bk"],
            prep["wv_z"], prep["wv_r"], prep["bv"],
            prep["wo"], prep["bo"])
    return pl.pallas_call(
        partial(_fused_kernel, num_heads=num_heads, head_dim=head_dim,
                c_q=c_q, compute_dtype=compute_dtype),
        out_shape=jax.ShapeDtypeStruct((L, c_q + E), jnp.float32),
        in_specs=[_vmem()] * len(args),
        out_specs=_vmem(),
    )(*args)


# ----------------------------------------------------------------------------
# One-time parameter preparation (pre-transpose / pre-slice / optional bf16)
# ----------------------------------------------------------------------------
def prepare_params(params, c_key, c_query, num_heads,
                   compute_dtype=jnp.float32):
    f32 = jnp.float32
    E = params["out_w"].shape[0]
    hd = E // num_heads
    in_w = params["in_w"].astype(f32)
    in_b = params["in_b"].astype(f32)

    def split(start, c_split):
        w_t = in_w[start:start + E].T                        # (E_in, E_out)
        per_head = jnp.transpose(w_t.reshape(E, num_heads, hd), (1, 0, 2))
        return (per_head[:, :c_split, :].astype(compute_dtype),
                per_head[:, c_split:, :].astype(compute_dtype))

    wq_z, wq_l = split(0, c_query)
    wk_z, wk_r = split(E, c_key)
    wv_z, wv_r = split(2 * E, c_key)
    return {
        "w1t": params["w1"].astype(f32).T,
        "b1": params["b1"].astype(f32).reshape(1, -1),
        "w2t": params["w2"].astype(f32).T,
        "b2": params["b2"].astype(f32).reshape(1, -1),
        "wq_z": wq_z, "wq_l": wq_l,
        "bq": in_b[0:E].reshape(num_heads, 1, hd),
        "wk_z": wk_z, "wk_r": wk_r,
        "bk": in_b[E:2 * E].reshape(num_heads, 1, hd),
        "wv_z": wv_z, "wv_r": wv_r,
        "bv": in_b[2 * E:3 * E].reshape(num_heads, 1, hd),
        "wo": params["out_w"].astype(f32).T.reshape(num_heads, hd, E)
                                          .astype(compute_dtype),
        "bo": params["out_b"].astype(f32).reshape(1, E),
    }


# ----------------------------------------------------------------------------
# FeatureAggregation.forward
# ----------------------------------------------------------------------------
def feature_aggregation_forward(prep, Z, Q, q_z, r, *, num_heads, head_dim,
                                compute_dtype=jnp.float32):
    size_q, size_k, _ = r.shape
    qr = r.reshape(-1, 2).astype(jnp.float32)
    Zr = bilinear_interpolation_pallas(Z, qr[:, 0], qr[:, 1], compute_dtype)
    # Zr is already (size_q*size_k, C); the module's reshape to
    # (size_q, size_k, -1) and back is a no-op and skipped.
    return fused_attention_pallas(
        Zr, qr, Q.astype(jnp.float32), q_z.astype(jnp.float32), prep,
        num_heads=num_heads, head_dim=head_dim, compute_dtype=compute_dtype)


# ----------------------------------------------------------------------------
# Pure-JAX reference (mirrors the PyTorch code) for correctness checking
# ----------------------------------------------------------------------------
def reference_forward(params, Z, Q, q_z, r, num_heads):
    size_q, size_k, _ = r.shape
    C, H, W = Z.shape
    qr = r.reshape(-1, 2)
    qx, qy = qr[:, 0], qr[:, 1]
    x1 = qx.astype(jnp.int32)
    y1 = qy.astype(jnp.int32)
    x2, y2 = x1 + 1, y1 + 1
    x1 = jnp.clip(x1, 0, H - 1)
    y1 = jnp.clip(y1, 0, W - 1)
    x2 = jnp.clip(x2, 0, H - 1)
    y2 = jnp.clip(y2, 0, W - 1)
    Q11, Q12 = Z[:, x1, y1], Z[:, x1, y2]
    Q21, Q22 = Z[:, x2, y1], Z[:, x2, y2]
    dx = qx - x1.astype(jnp.float32)
    dy = qy - y1.astype(jnp.float32)
    R1 = Q11 * (1 - dx) + Q21 * dx
    R2 = Q12 * (1 - dx) + Q22 * dx
    interp = R1 * (1 - dy) + R2 * dy
    Zr = interp.reshape(-1, C).reshape(size_q, size_k, -1)

    r_lin = (qr @ params["w1"].T + params["b1"]).reshape(size_q, size_k, -1)
    key = jnp.concatenate([Zr, r_lin], axis=2).reshape(size_q * size_k, -1)
    value = key
    q_lin = Q @ params["w2"].T + params["b2"]
    query = jnp.concatenate([q_z, q_lin], axis=1)

    E = query.shape[1]
    hd = E // num_heads
    wq, wk, wv = (params["in_w"][:E], params["in_w"][E:2 * E],
                  params["in_w"][2 * E:])
    bq, bk, bv = (params["in_b"][:E], params["in_b"][E:2 * E],
                  params["in_b"][2 * E:])
    q = query @ wq.T + bq
    k = key @ wk.T + bk
    v = value @ wv.T + bv
    L, S = q.shape[0], k.shape[0]
    qh = q.reshape(L, num_heads, hd).transpose(1, 0, 2)
    kh = k.reshape(S, num_heads, hd).transpose(1, 0, 2)
    vh = v.reshape(S, num_heads, hd).transpose(1, 0, 2)
    s = jnp.einsum("hld,hsd->hls", qh, kh) / math.sqrt(hd)
    p = jax.nn.softmax(s, axis=-1)
    ctx = jnp.einsum("hls,hsd->hld", p, vh).transpose(1, 0, 2).reshape(L, E)
    attn_out = (ctx @ params["out_w"].T + params["out_b"]).reshape(size_q, -1)
    return jnp.concatenate([q_z, attn_out], axis=1)


if __name__ == "__main__":
    # Small, self-consistent shapes:
    #   Z: (C, H, W), Q: (size_q, 3), q_z: (size_q, C), r: (size_q, size_k, 2)
    #   attn_embed_dim = C + h2 (key dim) = dim(q_z) + h2 (query dim)
    C, H, W = 8, 16, 16
    h2 = 8
    attn_embed_dim = C + h2          # 16
    attn_num_heads = 2
    head_dim = attn_embed_dim // attn_num_heads
    size_q, size_k = 4, 8

    root = jax.random.PRNGKey(0)
    ks = jax.random.split(root, 12)
    Z = jax.random.normal(ks[0], (C, H, W), jnp.float32)
    Qin = jax.random.normal(ks[1], (size_q, 3), jnp.float32)
    q_z = jax.random.normal(ks[2], (size_q, C), jnp.float32)
    r = jax.random.uniform(ks[3], (size_q, size_k, 2), jnp.float32,
                           minval=0.0, maxval=float(H - 1))

    params = {
        "w1": 0.3 * jax.random.normal(ks[4], (h2, 2), jnp.float32),
        "b1": 0.1 * jax.random.normal(ks[5], (h2,), jnp.float32),
        "w2": 0.3 * jax.random.normal(ks[6], (h2, 3), jnp.float32),
        "b2": 0.1 * jax.random.normal(ks[7], (h2,), jnp.float32),
        "in_w": 0.3 * jax.random.normal(ks[8], (3 * attn_embed_dim, attn_embed_dim), jnp.float32),
        "in_b": 0.1 * jax.random.normal(ks[9], (3 * attn_embed_dim,), jnp.float32),
        "out_w": 0.3 * jax.random.normal(ks[10], (attn_embed_dim, attn_embed_dim), jnp.float32),
        "out_b": 0.1 * jax.random.normal(ks[11], (attn_embed_dim,), jnp.float32),
    }

    z_ref = reference_forward(params, Z, Qin, q_z, r, attn_num_heads)

    # --- f32 path (exact compute; v5e-friendly), checked tightly -------------
    prep32 = prepare_params(params, c_key=C, c_query=q_z.shape[1],
                            num_heads=attn_num_heads,
                            compute_dtype=jnp.float32)
    fwd32 = jax.jit(partial(feature_aggregation_forward,
                            num_heads=attn_num_heads, head_dim=head_dim,
                            compute_dtype=jnp.float32))
    z32 = jax.block_until_ready(fwd32(prep32, Z, Qin, q_z, r))
    np.testing.assert_allclose(np.asarray(z32), np.asarray(z_ref),
                               rtol=5e-3, atol=5e-3)

    # --- bf16 MXU-operand path (v6e / v7x), f32 accumulation; sanity check ---
    prepbf = prepare_params(params, c_key=C, c_query=q_z.shape[1],
                            num_heads=attn_num_heads,
                            compute_dtype=jnp.bfloat16)
    fwdbf = jax.jit(partial(feature_aggregation_forward,
                            num_heads=attn_num_heads, head_dim=head_dim,
                            compute_dtype=jnp.bfloat16))
    zbf = jax.block_until_ready(fwdbf(prepbf, Z, Qin, q_z, r))
    np.testing.assert_allclose(np.asarray(zbf), np.asarray(z_ref),
                               rtol=1e-1, atol=1e-1)

    print("KERNEL_OK")
</pallas_src>

<mosaic_0001>
module attributes {stable_mosaic.version = 11 : i64} {
  func.func @_bilinear_kernel(%arg0: i32, %arg1: memref<8x256xf32, #tpu.memory_space<vmem>>, %arg2: memref<1x32xf32, #tpu.memory_space<vmem>>, %arg3: memref<1x32xf32, #tpu.memory_space<vmem>>, %arg4: memref<8x32xf32, #tpu.memory_space<vmem>>) attributes {dimension_semantics = [#tpu.dimension_semantics<parallel>], iteration_bounds = array<i64: 1>, scalar_prefetch = 0 : i64, scratch_operands = 0 : i64, tpu.core_type = #tpu.core_type<tc>, window_params = [{pipeline_mode = #tpu.pipeline_mode<synchronous>, transform_indices = @transform_0, window_bounds = array<i64: 8, 256>}, {transform_indices = @transform_1, window_bounds = array<i64: 1, 32>}, {transform_indices = @transform_2, window_bounds = array<i64: 1, 32>}, {transform_indices = @transform_3, window_bounds = array<i64: 8, 32>}]} {
    %c0 = arith.constant 0 : index
    %c0_0 = arith.constant 0 : index
    %0 = vector.load %arg2[%c0, %c0_0] : memref<1x32xf32, #tpu.memory_space<vmem>>, vector<1x32xf32>
    %c0_1 = arith.constant 0 : index
    %c0_2 = arith.constant 0 : index
    %1 = vector.load %arg3[%c0_1, %c0_2] : memref<1x32xf32, #tpu.memory_space<vmem>>, vector<1x32xf32>
    %2 = arith.fptosi %0 : vector<1x32xf32> to vector<1x32xi32>
    %3 = arith.fptosi %1 : vector<1x32xf32> to vector<1x32xi32>
    %c1_i32 = arith.constant 1 : i32
    %4 = vector.broadcast %c1_i32 : i32 to vector<1x32xi32>
    %5 = arith.addi %2, %4 : vector<1x32xi32>
    %c0_i32 = arith.constant 0 : i32
    %c15_i32 = arith.constant 15 : i32
    %6 = vector.broadcast %c0_i32 : i32 to vector<1x32xi32>
    %7 = arith.maxsi %6, %5 : vector<1x32xi32>
    %8 = vector.broadcast %c15_i32 : i32 to vector<1x32xi32>
    %9 = arith.minsi %8, %7 : vector<1x32xi32>
    %c1_i32_3 = arith.constant 1 : i32
    %10 = vector.broadcast %c1_i32_3 : i32 to vector<1x32xi32>
    %11 = arith.addi %3, %10 : vector<1x32xi32>
    %c0_i32_4 = arith.constant 0 : i32
    %c15_i32_5 = arith.constant 15 : i32
    %12 = vector.broadcast %c0_i32_4 : i32 to vector<1x32xi32>
    %13 = arith.maxsi %12, %11 : vector<1x32xi32>
    %14 = vector.broadcast %c15_i32_5 : i32 to vector<1x32xi32>
    %15 = arith.minsi %14, %13 : vector<1x32xi32>
    %c0_i32_6 = arith.constant 0 : i32
    %c15_i32_7 = arith.constant 15 : i32
    %16 = vector.broadcast %c0_i32_6 : i32 to vector<1x32xi32>
    %17 = arith.maxsi %16, %2 : vector<1x32xi32>
    %18 = vector.broadcast %c15_i32_7 : i32 to vector<1x32xi32>
    %19 = arith.minsi %18, %17 : vector<1x32xi32>
    %c0_i32_8 = arith.constant 0 : i32
    %c15_i32_9 = arith.constant 15 : i32
    %20 = vector.broadcast %c0_i32_8 : i32 to vector<1x32xi32>
    %21 = arith.maxsi %20, %3 : vector<1x32xi32>
    %22 = vector.broadcast %c15_i32_9 : i32 to vector<1x32xi32>
    %23 = arith.minsi %22, %21 : vector<1x32xi32>
    %24 = arith.sitofp %19 : vector<1x32xi32> to vector<1x32xf32>
    %25 = arith.subf %0, %24 : vector<1x32xf32>
    %26 = arith.sitofp %23 : vector<1x32xi32> to vector<1x32xf32>
    %27 = arith.subf %1, %26 : vector<1x32xf32>
    %cst = arith.constant 1.000000e+00 : f32
    %28 = vector.broadcast %cst : f32 to vector<1x32xf32>
    %29 = arith.subf %28, %25 : vector<1x32xf32>
    %cst_10 = arith.constant 1.000000e+00 : f32
    %30 = vector.broadcast %cst_10 : f32 to vector<1x32xf32>
    %31 = arith.subf %30, %27 : vector<1x32xf32>
    %32 = arith.mulf %29, %31 : vector<1x32xf32>
    %cst_11 = arith.constant 1.000000e+00 : f32
    %33 = vector.broadcast %cst_11 : f32 to vector<1x32xf32>
    %34 = arith.subf %33, %27 : vector<1x32xf32>
    %35 = arith.mulf %25, %34 : vector<1x32xf32>
    %cst_12 = arith.constant 1.000000e+00 : f32
    %36 = vector.broadcast %cst_12 : f32 to vector<1x32xf32>
    %37 = arith.subf %36, %25 : vector<1x32xf32>
    %38 = arith.mulf %37, %27 : vector<1x32xf32>
    %39 = arith.mulf %25, %27 : vector<1x32xf32>
    %40 = tpu.iota {dimensions = array<i32: 0>} : vector<256x32xi32>
    %c16_i32 = arith.constant 16 : i32
    %41 = vector.broadcast %c16_i32 : i32 to vector<1x32xi32>
    %42 = arith.muli %19, %41 : vector<1x32xi32>
    %43 = arith.addi %42, %23 : vector<1x32xi32>
    %44 = vector.broadcast %43 : vector<1x32xi32> to vector<256x32xi32>
    %45 = arith.cmpi eq, %40, %44 : vector<256x32xi32>
    %cst_13 = arith.constant 0.000000e+00 : f32
    %46 = vector.shape_cast %32 : vector<1x32xf32> to vector<1x32xf32>
    %47 = vector.broadcast %46 : vector<1x32xf32> to vector<256x32xf32>
    %48 = vector.broadcast %cst_13 : f32 to vector<256x32xf32>
    %49 = arith.select %45, %47, %48 : vector<256x32xi1>, vector<256x32xf32>
    %c16_i32_14 = arith.constant 16 : i32
    %50 = vector.broadcast %c16_i32_14 : i32 to vector<1x32xi32>
    %51 = arith.muli %19, %50 : vector<1x32xi32>
    %52 = arith.addi %51, %15 : vector<1x32xi32>
    %53 = vector.broadcast %52 : vector<1x32xi32> to vector<256x32xi32>
    %54 = arith.cmpi eq, %40, %53 : vector<256x32xi32>
    %cst_15 = arith.constant 0.000000e+00 : f32
    %55 = vector.shape_cast %38 : vector<1x32xf32> to vector<1x32xf32>
    %56 = vector.broadcast %55 : vector<1x32xf32> to vector<256x32xf32>
    %57 = vector.broadcast %cst_15 : f32 to vector<256x32xf32>
    %58 = arith.select %54, %56, %57 : vector<256x32xi1>, vector<256x32xf32>
    %59 = arith.addf %49, %58 : vector<256x32xf32>
    %c16_i32_16 = arith.constant 16 : i32
    %60 = vector.broadcast %c16_i32_16 : i32 to vector<1x32xi32>
    %61 = arith.muli %9, %60 : vector<1x32xi32>
    %62 = arith.addi %61, %23 : vector<1x32xi32>
    %63 = vector.broadcast %62 : vector<1x32xi32> to vector<256x32xi32>
    %64 = arith.cmpi eq, %40, %63 : vector<256x32xi32>
    %cst_17 = arith.constant 0.000000e+00 : f32
    %65 = vector.shape_cast %35 : vector<1x32xf32> to vector<1x32xf32>
    %66 = vector.broadcast %65 : vector<1x32xf32> to vector<256x32xf32>
    %67 = vector.broadcast %cst_17 : f32 to vector<256x32xf32>
    %68 = arith.select %64, %66, %67 : vector<256x32xi1>, vector<256x32xf32>
    %69 = arith.addf %59, %68 : vector<256x32xf32>
    %c16_i32_18 = arith.constant 16 : i32
    %70 = vector.broadcast %c16_i32_18 : i32 to vector<1x32xi32>
    %71 = arith.muli %9, %70 : vector<1x32xi32>
    %72 = arith.addi %71, %15 : vector<1x32xi32>
    %73 = vector.broadcast %72 : vector<1x32xi32> to vector<256x32xi32>
    %74 = arith.cmpi eq, %40, %73 : vector<256x32xi32>
    %cst_19 = arith.constant 0.000000e+00 : f32
    %75 = vector.shape_cast %39 : vector<1x32xf32> to vector<1x32xf32>
    %76 = vector.broadcast %75 : vector<1x32xf32> to vector<256x32xf32>
    %77 = vector.broadcast %cst_19 : f32 to vector<256x32xf32>
    %78 = arith.select %74, %76, %77 : vector<256x32xi1>, vector<256x32xf32>
    %79 = arith.addf %69, %78 : vector<256x32xf32>
    %c0_20 = arith.constant 0 : index
    %c0_21 = arith.constant 0 : index
    %80 = vector.load %arg1[%c0_20, %c0_21] : memref<8x256xf32, #tpu.memory_space<vmem>>, vector<8x256xf32>
    %cst_22 = arith.constant dense<0.000000e+00> : vector<8x32xf32>
    %81 = tpu.matmul %80, %79, %cst_22 {dimension_numbers = #tpu.dot_dimension_numbers<[1], [0], [0], [1], [0, 0, 1, 1], [], []>} : vector<8x256xf32>, vector<256x32xf32>, vector<8x32xf32> -> vector<8x32xf32>
    %c0_23 = arith.constant 0 : index
    %c0_24 = arith.constant 0 : index
    %82 = vector.load %arg4[%c0_23, %c0_24] : memref<8x32xf32, #tpu.memory_space<vmem>>, vector<8x32xf32>
    tpu.vector_store %arg4[%c0_23, %c0_24], %81 {strides = array<i32>} : memref<8x32xf32, #tpu.memory_space<vmem>>, vector<8x32xf32>,
    return
  }
  func.func @transform_0(%arg0: i32) -> (i32, i32) {
    %c0_i32 = arith.constant 0 : i32
    %c0_i32_0 = arith.constant 0 : i32
    %c0_i32_1 = arith.constant 0 : i32
    return %c0_i32, %c0_i32_0 : i32, i32
  }
  func.func @transform_1(%arg0: i32) -> (i32, i32) {
    %c0_i32 = arith.constant 0 : i32
    %c0_i32_0 = arith.constant 0 : i32
    return %c0_i32, %arg0 : i32, i32
  }
  func.func @transform_2(%arg0: i32) -> (i32, i32) {
    %c0_i32 = arith.constant 0 : i32
    %c0_i32_0 = arith.constant 0 : i32
    return %c0_i32, %arg0 : i32, i32
  }
  func.func @transform_3(%arg0: i32) -> (i32, i32) {
    %c0_i32 = arith.constant 0 : i32
    %c0_i32_0 = arith.constant 0 : i32
    return %c0_i32, %arg0 : i32, i32
  }
}

module attributes {stable_mosaic.version = 11 : i64} {
  func.func @_fused_kernel(%arg0: memref<32x8xf32, #tpu.memory_space<vmem>>, %arg1: memref<32x2xf32, #tpu.memory_space<vmem>>, %arg2: memref<4x3xf32, #tpu.memory_space<vmem>>, %arg3: memref<4x8xf32, #tpu.memory_space<vmem>>, %arg4: memref<2x8xf32, #tpu.memory_space<vmem>>, %arg5: memref<1x8xf32, #tpu.memory_space<vmem>>, %arg6: memref<3x8xf32, #tpu.memory_space<vmem>>, %arg7: memref<1x8xf32, #tpu.memory_space<vmem>>, %arg8: memref<2x8x8xf32, #tpu.memory_space<vmem>>, %arg9: memref<2x8x8xf32, #tpu.memory_space<vmem>>, %arg10: memref<2x1x8xf32, #tpu.memory_space<vmem>>, %arg11: memref<2x8x8xf32, #tpu.memory_space<vmem>>, %arg12: memref<2x8x8xf32, #tpu.memory_space<vmem>>, %arg13: memref<2x1x8xf32, #tpu.memory_space<vmem>>, %arg14: memref<2x8x8xf32, #tpu.memory_space<vmem>>, %arg15: memref<2x8x8xf32, #tpu.memory_space<vmem>>, %arg16: memref<2x1x8xf32, #tpu.memory_space<vmem>>, %arg17: memref<2x8x16xf32, #tpu.memory_space<vmem>>, %arg18: memref<1x16xf32, #tpu.memory_space<vmem>>, %arg19: memref<4x24xf32, #tpu.memory_space<vmem>>) attributes {dimension_semantics = [], scalar_prefetch = 0 : i64, scratch_operands = 0 : i64, tpu.core_type = #tpu.core_type<tc>} {
    %c0 = arith.constant 0 : index
    %c0_0 = arith.constant 0 : index
    %0 = vector.load %arg0[%c0, %c0_0] : memref<32x8xf32, #tpu.memory_space<vmem>>, vector<32x8xf32>
    %c0_1 = arith.constant 0 : index
    %c0_2 = arith.constant 0 : index
    %1 = vector.load %arg1[%c0_1, %c0_2] : memref<32x2xf32, #tpu.memory_space<vmem>>, vector<32x2xf32>
    %c0_3 = arith.constant 0 : index
    %c0_4 = arith.constant 0 : index
    %2 = vector.load %arg2[%c0_3, %c0_4] : memref<4x3xf32, #tpu.memory_space<vmem>>, vector<4x3xf32>
    %c0_5 = arith.constant 0 : index
    %c0_6 = arith.constant 0 : index
    %3 = vector.load %arg3[%c0_5, %c0_6] : memref<4x8xf32, #tpu.memory_space<vmem>>, vector<4x8xf32>
    %c0_7 = arith.constant 0 : index
    %c0_8 = arith.constant 0 : index
    %4 = vector.load %arg4[%c0_7, %c0_8] : memref<2x8xf32, #tpu.memory_space<vmem>>, vector<2x8xf32>
    %5 = vector.extract_strided_slice %1 {offsets = [0, 0], sizes = [32, 1], strides = [1, 1]} : vector<32x2xf32> to vector<32x1xf32>
    %6 = vector.extract_strided_slice %4 {offsets = [0, 0], sizes = [1, 8], strides = [1, 1]} : vector<2x8xf32> to vector<1x8xf32>
    %7 = vector.broadcast %5 : vector<32x1xf32> to vector<32x8xf32>
    %8 = vector.broadcast %6 : vector<1x8xf32> to vector<32x8xf32>
    %9 = arith.mulf %7, %8 : vector<32x8xf32>
    %10 = vector.extract_strided_slice %1 {offsets = [0, 1], sizes = [32, 1], strides = [1, 1]} : vector<32x2xf32> to vector<32x1xf32>
    %11 = vector.extract_strided_slice %4 {offsets = [1, 0], sizes = [1, 8], strides = [1, 1]} : vector<2x8xf32> to vector<1x8xf32>
    %12 = vector.broadcast %10 : vector<32x1xf32> to vector<32x8xf32>
    %13 = vector.broadcast %11 : vector<1x8xf32> to vector<32x8xf32>
    %14 = arith.mulf %12, %13 : vector<32x8xf32>
    %15 = arith.addf %9, %14 : vector<32x8xf32>
    %c0_9 = arith.constant 0 : index
    %c0_10 = arith.constant 0 : index
    %16 = vector.load %arg5[%c0_9, %c0_10] : memref<1x8xf32, #tpu.memory_space<vmem>>, vector<1x8xf32>
    %17 = vector.broadcast %16 : vector<1x8xf32> to vector<32x8xf32>
    %18 = arith.addf %15, %17 : vector<32x8xf32>
    %c0_11 = arith.constant 0 : index
    %c0_12 = arith.constant 0 : index
    %19 = vector.load %arg6[%c0_11, %c0_12] : memref<3x8xf32, #tpu.memory_space<vmem>>, vector<3x8xf32>
    %20 = vector.extract_strided_slice %2 {offsets = [0, 0], sizes = [4, 1], strides = [1, 1]} : vector<4x3xf32> to vector<4x1xf32>
    %21 = vector.extract_strided_slice %19 {offsets = [0, 0], sizes = [1, 8], strides = [1, 1]} : vector<3x8xf32> to vector<1x8xf32>
    %22 = vector.broadcast %20 : vector<4x1xf32> to vector<4x8xf32>
    %23 = vector.broadcast %21 : vector<1x8xf32> to vector<4x8xf32>
    %24 = arith.mulf %22, %23 : vector<4x8xf32>
    %25 = vector.extract_strided_slice %2 {offsets = [0, 1], sizes = [4, 1], strides = [1, 1]} : vector<4x3xf32> to vector<4x1xf32>
    %26 = vector.extract_strided_slice %19 {offsets = [1, 0], sizes = [1, 8], strides = [1, 1]} : vector<3x8xf32> to vector<1x8xf32>
    %27 = vector.broadcast %25 : vector<4x1xf32> to vector<4x8xf32>
    %28 = vector.broadcast %26 : vector<1x8xf32> to vector<4x8xf32>
    %29 = arith.mulf %27, %28 : vector<4x8xf32>
    %30 = arith.addf %24, %29 : vector<4x8xf32>
    %31 = vector.extract_strided_slice %2 {offsets = [0, 2], sizes = [4, 1], strides = [1, 1]} : vector<4x3xf32> to vector<4x1xf32>
    %32 = vector.extract_strided_slice %19 {offsets = [2, 0], sizes = [1, 8], strides = [1, 1]} : vector<3x8xf32> to vector<1x8xf32>
    %33 = vector.broadcast %31 : vector<4x1xf32> to vector<4x8xf32>
    %34 = vector.broadcast %32 : vector<1x8xf32> to vector<4x8xf32>
    %35 = arith.mulf %33, %34 : vector<4x8xf32>
    %36 = arith.addf %30, %35 : vector<4x8xf32>
    %c0_13 = arith.constant 0 : index
    %c0_14 = arith.constant 0 : index
    %37 = vector.load %arg7[%c0_13, %c0_14] : memref<1x8xf32, #tpu.memory_space<vmem>>, vector<1x8xf32>
    %38 = vector.broadcast %37 : vector<1x8xf32> to vector<4x8xf32>
    %39 = arith.addf %36, %38 : vector<4x8xf32>
    %c0_15 = arith.constant 0 : index
    %c0_16 = arith.constant 0 : index
    %c0_17 = arith.constant 0 : index
    %40 = vector.load %arg8[%c0_15, %c0_16, %c0_17] : memref<2x8x8xf32, #tpu.memory_space<vmem>>, vector<1x8x8xf32>
    %41 = vector.shape_cast %40 : vector<1x8x8xf32> to vector<8x8xf32>
    %cst = arith.constant dense<0.000000e+00> : vector<4x8xf32>
    %42 = tpu.matmul %3, %41, %cst {dimension_numbers = #tpu.dot_dimension_numbers<[1], [0], [0], [1], [0, 0, 1, 1], [], []>} : vector<4x8xf32>, vector<8x8xf32>, vector<4x8xf32> -> vector<4x8xf32>
    %c0_18 = arith.constant 0 : index
    %c0_19 = arith.constant 0 : index
    %c0_20 = arith.constant 0 : index
    %43 = vector.load %arg9[%c0_18, %c0_19, %c0_20] : memref<2x8x8xf32, #tpu.memory_space<vmem>>, vector<1x8x8xf32>
    %44 = vector.shape_cast %43 : vector<1x8x8xf32> to vector<8x8xf32>
    %cst_21 = arith.constant dense<0.000000e+00> : vector<4x8xf32>
    %45 = tpu.matmul %39, %44, %cst_21 {dimension_numbers = #tpu.dot_dimension_numbers<[1], [0], [0], [1], [0, 0, 1, 1], [], []>} : vector<4x8xf32>, vector<8x8xf32>, vector<4x8xf32> -> vector<4x8xf32>
    %46 = arith.addf %42, %45 : vector<4x8xf32>
    %c0_22 = arith.constant 0 : index
    %c0_23 = arith.constant 0 : index
    %c0_24 = arith.constant 0 : index
    %47 = vector.load %arg10[%c0_22, %c0_23, %c0_24] : memref<2x1x8xf32, #tpu.memory_space<vmem>>, vector<1x1x8xf32>
    %48 = vector.shape_cast %47 : vector<1x1x8xf32> to vector<1x8xf32>
    %49 = vector.broadcast %48 : vector<1x8xf32> to vector<4x8xf32>
    %50 = arith.addf %46, %49 : vector<4x8xf32>
    %c0_25 = arith.constant 0 : index
    %c0_26 = arith.constant 0 : index
    %c0_27 = arith.constant 0 : index
    %51 = vector.load %arg11[%c0_25, %c0_26, %c0_27] : memref<2x8x8xf32, #tpu.memory_space<vmem>>, vector<1x8x8xf32>
    %52 = vector.shape_cast %51 : vector<1x8x8xf32> to vector<8x8xf32>
    %cst_28 = arith.constant dense<0.000000e+00> : vector<32x8xf32>
    %53 = tpu.matmul %0, %52, %cst_28 {dimension_numbers = #tpu.dot_dimension_numbers<[1], [0], [0], [1], [0, 0, 1, 1], [], []>} : vector<32x8xf32>, vector<8x8xf32>, vector<32x8xf32> -> vector<32x8xf32>
    %c0_29 = arith.constant 0 : index
    %c0_30 = arith.constant 0 : index
    %c0_31 = arith.constant 0 : index
    %54 = vector.load %arg12[%c0_29, %c0_30, %c0_31] : memref<2x8x8xf32, #tpu.memory_space<vmem>>, vector<1x8x8xf32>
    %55 = vector.shape_cast %54 : vector<1x8x8xf32> to vector<8x8xf32>
    %cst_32 = arith.constant dense<0.000000e+00> : vector<32x8xf32>
    %56 = tpu.matmul %18, %55, %cst_32 {dimension_numbers = #tpu.dot_dimension_numbers<[1], [0], [0], [1], [0, 0, 1, 1], [], []>} : vector<32x8xf32>, vector<8x8xf32>, vector<32x8xf32> -> vector<32x8xf32>
    %57 = arith.addf %53, %56 : vector<32x8xf32>
    %c0_33 = arith.constant 0 : index
    %c0_34 = arith.constant 0 : index
    %c0_35 = arith.constant 0 : index
    %58 = vector.load %arg13[%c0_33, %c0_34, %c0_35] : memref<2x1x8xf32, #tpu.memory_space<vmem>>, vector<1x1x8xf32>
    %59 = vector.shape_cast %58 : vector<1x1x8xf32> to vector<1x8xf32>
    %60 = vector.broadcast %59 : vector<1x8xf32> to vector<32x8xf32>
    %61 = arith.addf %57, %60 : vector<32x8xf32>
    %c0_36 = arith.constant 0 : index
    %c0_37 = arith.constant 0 : index
    %c0_38 = arith.constant 0 : index
    %62 = vector.load %arg14[%c0_36, %c0_37, %c0_38] : memref<2x8x8xf32, #tpu.memory_space<vmem>>, vector<1x8x8xf32>
    %63 = vector.shape_cast %62 : vector<1x8x8xf32> to vector<8x8xf32>
    %cst_39 = arith.constant dense<0.000000e+00> : vector<32x8xf32>
    %64 = tpu.matmul %0, %63, %cst_39 {dimension_numbers = #tpu.dot_dimension_numbers<[1], [0], [0], [1], [0, 0, 1, 1], [], []>} : vector<32x8xf32>, vector<8x8xf32>, vector<32x8xf32> -> vector<32x8xf32>
    %c0_40 = arith.constant 0 : index
    %c0_41 = arith.constant 0 : index
    %c0_42 = arith.constant 0 : index
    %65 = vector.load %arg15[%c0_40, %c0_41, %c0_42] : memref<2x8x8xf32, #tpu.memory_space<vmem>>, vector<1x8x8xf32>
    %66 = vector.shape_cast %65 : vector<1x8x8xf32> to vector<8x8xf32>
    %cst_43 = arith.constant dense<0.000000e+00> : vector<32x8xf32>
    %67 = tpu.matmul %18, %66, %cst_43 {dimension_numbers = #tpu.dot_dimension_numbers<[1], [0], [0], [1], [0, 0, 1, 1], [], []>} : vector<32x8xf32>, vector<8x8xf32>, vector<32x8xf32> -> vector<32x8xf32>
    %68 = arith.addf %64, %67 : vector<32x8xf32>
    %c0_44 = arith.constant 0 : index
    %c0_45 = arith.constant 0 : index
    %c0_46 = arith.constant 0 : index
    %69 = vector.load %arg16[%c0_44, %c0_45, %c0_46] : memref<2x1x8xf32, #tpu.memory_space<vmem>>, vector<1x1x8xf32>
    %70 = vector.shape_cast %69 : vector<1x1x8xf32> to vector<1x8xf32>
    %71 = vector.broadcast %70 : vector<1x8xf32> to vector<32x8xf32>
    %72 = arith.addf %68, %71 : vector<32x8xf32>
    %cst_47 = arith.constant 0.353553385 : f32
    %73 = vector.broadcast %cst_47 : f32 to vector<4x8xf32>
    %74 = arith.mulf %50, %73 : vector<4x8xf32>
    %cst_48 = arith.constant dense<0.000000e+00> : vector<4x32xf32>
    %75 = tpu.matmul %74, %61, %cst_48 {dimension_numbers = #tpu.dot_dimension_numbers<[1], [1], [0], [0], [0, 0, 1, 0], [], []>} : vector<4x8xf32>, vector<32x8xf32>, vector<4x32xf32> -> vector<4x32xf32>
    %cst_49 = arith.constant dense<0xFF800000> : vector<4xf32>
    %76 = vector.multi_reduction <maximumf>, %75, %cst_49 [1] : vector<4x32xf32> to vector<4xf32>
    %77 = vector.shape_cast %76 : vector<4xf32> to vector<4x1xf32>
    %78 = vector.broadcast %77 : vector<4x1xf32> to vector<4x32xf32>
    %79 = arith.subf %75, %78 : vector<4x32xf32>
    %80 = math.exp %79 : vector<4x32xf32>
    %cst_50 = arith.constant dense<0.000000e+00> : vector<4xf32>
    %81 = vector.multi_reduction <add>, %80, %cst_50 [1] : vector<4x32xf32> to vector<4xf32>
    %82 = vector.shape_cast %81 : vector<4xf32> to vector<4x1xf32>
    %83 = tpu.reciprocal %82 {approx = true} : vector<4x1xf32> -> vector<4x1xf32>
    %84 = vector.broadcast %83 : vector<4x1xf32> to vector<4x32xf32>
    %85 = arith.mulf %80, %84 : vector<4x32xf32>
    %cst_51 = arith.constant dense<0.000000e+00> : vector<4x8xf32>
    %86 = tpu.matmul %85, %72, %cst_51 {dimension_numbers = #tpu.dot_dimension_numbers<[1], [0], [0], [1], [0, 0, 1, 1], [], []>} : vector<4x32xf32>, vector<32x8xf32>, vector<4x8xf32> -> vector<4x8xf32>
    %c0_52 = arith.constant 0 : index
    %c0_53 = arith.constant 0 : index
    %c0_54 = arith.constant 0 : index
    %87 = vector.load %arg17[%c0_52, %c0_53, %c0_54] : memref<2x8x16xf32, #tpu.memory_space<vmem>>, vector<1x8x16xf32>
    %88 = vector.shape_cast %87 : vector<1x8x16xf32> to vector<8x16xf32>
    %cst_55 = arith.constant dense<0.000000e+00> : vector<4x16xf32>
    %89 = tpu.matmul %86, %88, %cst_55 {dimension_numbers = #tpu.dot_dimension_numbers<[1], [0], [0], [1], [0, 0, 1, 1], [], []>} : vector<4x8xf32>, vector<8x16xf32>, vector<4x16xf32> -> vector<4x16xf32>
    %c1 = arith.constant 1 : index
    %c0_56 = arith.constant 0 : index
    %c0_57 = arith.constant 0 : index
    %90 = vector.load %arg8[%c1, %c0_56, %c0_57] : memref<2x8x8xf32, #tpu.memory_space<vmem>>, vector<1x8x8xf32>
    %91 = vector.shape_cast %90 : vector<1x8x8xf32> to vector<8x8xf32>
    %cst_58 = arith.constant dense<0.000000e+00> : vector<4x8xf32>
    %92 = tpu.matmul %3, %91, %cst_58 {dimension_numbers = #tpu.dot_dimension_numbers<[1], [0], [0], [1], [0, 0, 1, 1], [], []>} : vector<4x8xf32>, vector<8x8xf32>, vector<4x8xf32> -> vector<4x8xf32>
    %c1_59 = arith.constant 1 : index
    %c0_60 = arith.constant 0 : index
    %c0_61 = arith.constant 0 : index
    %93 = vector.load %arg9[%c1_59, %c0_60, %c0_61] : memref<2x8x8xf32, #tpu.memory_space<vmem>>, vector<1x8x8xf32>
    %94 = vector.shape_cast %93 : vector<1x8x8xf32> to vector<8x8xf32>
    %cst_62 = arith.constant dense<0.000000e+00> : vector<4x8xf32>
    %95 = tpu.matmul %39, %94, %cst_62 {dimension_numbers = #tpu.dot_dimension_numbers<[1], [0], [0], [1], [0, 0, 1, 1], [], []>} : vector<4x8xf32>, vector<8x8xf32>, vector<4x8xf32> -> vector<4x8xf32>
    %96 = arith.addf %92, %95 : vector<4x8xf32>
    %c1_63 = arith.constant 1 : index
    %c0_64 = arith.constant 0 : index
    %c0_65 = arith.constant 0 : index
    %97 = vector.load %arg10[%c1_63, %c0_64, %c0_65] : memref<2x1x8xf32, #tpu.memory_space<vmem>>, vector<1x1x8xf32>
    %98 = vector.shape_cast %97 : vector<1x1x8xf32> to vector<1x8xf32>
    %99 = vector.broadcast %98 : vector<1x8xf32> to vector<4x8xf32>
    %100 = arith.addf %96, %99 : vector<4x8xf32>
    %c1_66 = arith.constant 1 : index
    %c0_67 = arith.constant 0 : index
    %c0_68 = arith.constant 0 : index
    %101 = vector.load %arg11[%c1_66, %c0_67, %c0_68] : memref<2x8x8xf32, #tpu.memory_space<vmem>>, vector<1x8x8xf32>
    %102 = vector.shape_cast %101 : vector<1x8x8xf32> to vector<8x8xf32>
    %cst_69 = arith.constant dense<0.000000e+00> : vector<32x8xf32>
    %103 = tpu.matmul %0, %102, %cst_69 {dimension_numbers = #tpu.dot_dimension_numbers<[1], [0], [0], [1], [0, 0, 1, 1], [], []>} : vector<32x8xf32>, vector<8x8xf32>, vector<32x8xf32> -> vector<32x8xf32>
    %c1_70 = arith.constant 1 : index
    %c0_71 = arith.constant 0 : index
    %c0_72 = arith.constant 0 : index
    %104 = vector.load %arg12[%c1_70, %c0_71, %c0_72] : memref<2x8x8xf32, #tpu.memory_space<vmem>>, vector<1x8x8xf32>
    %105 = vector.shape_cast %104 : vector<1x8x8xf32> to vector<8x8xf32>
    %cst_73 = arith.constant dense<0.000000e+00> : vector<32x8xf32>
    %106 = tpu.matmul %18, %105, %cst_73 {dimension_numbers = #tpu.dot_dimension_numbers<[1], [0], [0], [1], [0, 0, 1, 1], [], []>} : vector<32x8xf32>, vector<8x8xf32>, vector<32x8xf32> -> vector<32x8xf32>
    %107 = arith.addf %103, %106 : vector<32x8xf32>
    %c1_74 = arith.constant 1 : index
    %c0_75 = arith.constant 0 : index
    %c0_76 = arith.constant 0 : index
    %108 = vector.load %arg13[%c1_74, %c0_75, %c0_76] : memref<2x1x8xf32, #tpu.memory_space<vmem>>, vector<1x1x8xf32>
    %109 = vector.shape_cast %108 : vector<1x1x8xf32> to vector<1x8xf32>
    %110 = vector.broadcast %109 : vector<1x8xf32> to vector<32x8xf32>
    %111 = arith.addf %107, %110 : vector<32x8xf32>
    %c1_77 = arith.constant 1 : index
    %c0_78 = arith.constant 0 : index
    %c0_79 = arith.constant 0 : index
    %112 = vector.load %arg14[%c1_77, %c0_78, %c0_79] : memref<2x8x8xf32, #tpu.memory_space<vmem>>, vector<1x8x8xf32>
    %113 = vector.shape_cast %112 : vector<1x8x8xf32> to vector<8x8xf32>
    %cst_80 = arith.constant dense<0.000000e+00> : vector<32x8xf32>
    %114 = tpu.matmul %0, %113, %cst_80 {dimension_numbers = #tpu.dot_dimension_numbers<[1], [0], [0], [1], [0, 0, 1, 1], [], []>} : vector<32x8xf32>, vector<8x8xf32>, vector<32x8xf32> -> vector<32x8xf32>
    %c1_81 = arith.constant 1 : index
    %c0_82 = arith.constant 0 : index
    %c0_83 = arith.constant 0 : index
    %115 = vector.load %arg15[%c1_81, %c0_82, %c0_83] : memref<2x8x8xf32, #tpu.memory_space<vmem>>, vector<1x8x8xf32>
    %116 = vector.shape_cast %115 : vector<1x8x8xf32> to vector<8x8xf32>
    %cst_84 = arith.constant dense<0.000000e+00> : vector<32x8xf32>
    %117 = tpu.matmul %18, %116, %cst_84 {dimension_numbers = #tpu.dot_dimension_numbers<[1], [0], [0], [1], [0, 0, 1, 1], [], []>} : vector<32x8xf32>, vector<8x8xf32>, vector<32x8xf32> -> vector<32x8xf32>
    %118 = arith.addf %114, %117 : vector<32x8xf32>
    %c1_85 = arith.constant 1 : index
    %c0_86 = arith.constant 0 : index
    %c0_87 = arith.constant 0 : index
    %119 = vector.load %arg16[%c1_85, %c0_86, %c0_87] : memref<2x1x8xf32, #tpu.memory_space<vmem>>, vector<1x1x8xf32>
    %120 = vector.shape_cast %119 : vector<1x1x8xf32> to vector<1x8xf32>
    %121 = vector.broadcast %120 : vector<1x8xf32> to vector<32x8xf32>
    %122 = arith.addf %118, %121 : vector<32x8xf32>
    %cst_88 = arith.constant 0.353553385 : f32
    %123 = vector.broadcast %cst_88 : f32 to vector<4x8xf32>
    %124 = arith.mulf %100, %123 : vector<4x8xf32>
    %cst_89 = arith.constant dense<0.000000e+00> : vector<4x32xf32>
    %125 = tpu.matmul %124, %111, %cst_89 {dimension_numbers = #tpu.dot_dimension_numbers<[1], [1], [0], [0], [0, 0, 1, 0], [], []>} : vector<4x8xf32>, vector<32x8xf32>, vector<4x32xf32> -> vector<4x32xf32>
    %cst_90 = arith.constant dense<0xFF800000> : vector<4xf32>
    %126 = vector.multi_reduction <maximumf>, %125, %cst_90 [1] : vector<4x32xf32> to vector<4xf32>
    %127 = vector.shape_cast %126 : vector<4xf32> to vector<4x1xf32>
    %128 = vector.broadcast %127 : vector<4x1xf32> to vector<4x32xf32>
    %129 = arith.subf %125, %128 : vector<4x32xf32>
    %130 = math.exp %129 : vector<4x32xf32>
    %cst_91 = arith.constant dense<0.000000e+00> : vector<4xf32>
    %131 = vector.multi_reduction <add>, %130, %cst_91 [1] : vector<4x32xf32> to vector<4xf32>
    %132 = vector.shape_cast %131 : vector<4xf32> to vector<4x1xf32>
    %133 = tpu.reciprocal %132 {approx = true} : vector<4x1xf32> -> vector<4x1xf32>
    %134 = vector.broadcast %133 : vector<4x1xf32> to vector<4x32xf32>
    %135 = arith.mulf %130, %134 : vector<4x32xf32>
    %cst_92 = arith.constant dense<0.000000e+00> : vector<4x8xf32>
    %136 = tpu.matmul %135, %122, %cst_92 {dimension_numbers = #tpu.dot_dimension_numbers<[1], [0], [0], [1], [0, 0, 1, 1], [], []>} : vector<4x32xf32>, vector<32x8xf32>, vector<4x8xf32> -> vector<4x8xf32>
    %c1_93 = arith.constant 1 : index
    %c0_94 = arith.constant 0 : index
    %c0_95 = arith.constant 0 : index
    %137 = vector.load %arg17[%c1_93, %c0_94, %c0_95] : memref<2x8x16xf32, #tpu.memory_space<vmem>>, vector<1x8x16xf32>
    %138 = vector.shape_cast %137 : vector<1x8x16xf32> to vector<8x16xf32>
    %cst_96 = arith.constant dense<0.000000e+00> : vector<4x16xf32>
    %139 = tpu.matmul %136, %138, %cst_96 {dimension_numbers = #tpu.dot_dimension_numbers<[1], [0], [0], [1], [0, 0, 1, 1], [], []>} : vector<4x8xf32>, vector<8x16xf32>, vector<4x16xf32> -> vector<4x16xf32>
    %140 = arith.addf %89, %139 : vector<4x16xf32>
    %c0_97 = arith.constant 0 : index
    %c0_98 = arith.constant 0 : index
    %141 = vector.load %arg18[%c0_97, %c0_98] : memref<1x16xf32, #tpu.memory_space<vmem>>, vector<1x16xf32>
    %142 = vector.broadcast %141 : vector<1x16xf32> to vector<4x16xf32>
    %143 = arith.addf %140, %142 : vector<4x16xf32>
    %c0_99 = arith.constant 0 : index
    %c0_100 = arith.constant 0 : index
    %144 = vector.load %arg19[%c0_99, %c0_100] : memref<4x24xf32, #tpu.memory_space<vmem>>, vector<4x8xf32>
    tpu.vector_store %arg19[%c0_99, %c0_100], %3 {strides = array<i32>} : memref<4x24xf32, #tpu.memory_space<vmem>>, vector<4x8xf32>,
    %c0_101 = arith.constant 0 : index
    %c8 = arith.constant 8 : index
    %145 = vector.load %arg19[%c0_101, %c8] : memref<4x24xf32, #tpu.memory_space<vmem>>, vector<4x16xf32>
    tpu.vector_store %arg19[%c0_101, %c8], %143 {strides = array<i32>} : memref<4x24xf32, #tpu.memory_space<vmem>>, vector<4x16xf32>,
    return
  }
}

</mosaic_0001>

<bundles_post_ra>
// kernel: feature_aggregation_forward.2
= control target key start
LH: loop header
LB: loop body
LE: loop exit
PB: predicated region body
PF: predicated region fallthrough
CT: control target
= control target key end

     0   :  { %v46_v0 = vlaneseq  ;;  %s1011_s1 = inlined_call_operand.vmem [shape: f32[1,32], index: 1, kind: input, shape index: {}]   ;;  %s1012_s2 = inlined_call_operand.vmem [shape: f32[1,32], index: 2, kind: input, shape index: {}]   ;;  %s1013_s0 = inlined_call_operand.vmem [shape: f32[8,256], index: 0, kind: input, shape index: {}]   ;;  %s1014_s3 = inlined_call_operand.vmem [shape: f32[8,32], index: 3, kind: output, shape index: {}]  }
   0x1   :  { %v14_v1 = vld [vmem:[%s1011_s1] sm:$0x1]  ;;  %v478_v3 = vld [vmem:[%s1013_s0 + $0x8] sm:$0xff] }
   0x2   :  { %v15_v2 = vld [vmem:[%s1012_s2] sm:$0x1]  ;;  %v590_v4 = vtrunc.f32 %v14_v1  ;;  %v623_v6 = vshrl.u32 %v46_v0, 7  ;;  %543 = vmatprep.mubr.f32.mxu0 %v478_v3 }
   0x3   :  { %v592_v5 = vtrunc.f32 %v15_v2 }
   0x4   :  { %v591_v7 = vcvt.f32.s32 %v590_v4  ;;  %v626_v9 = vadd.s32 248, %v623_v6  ;;  %v83_v10 = vsub.s32 0, %v623_v6  ;;  %v630_v11 = vadd.s32 120, %v623_v6 }
   0x5   :  { %v593_v8 = vcvt.f32.s32 %v592_v5  ;;  %v633_v12 = vadd.s32 240, %v623_v6  ;;  %v636_v13 = vadd.s32 112, %v623_v6  ;;  %v639_v14 = vadd.s32 232, %v623_v6 }
   0x6   :  { %v18_v15 = vadd.s32 1, %v591_v7  ;;  %vm28_vm0 = vcmp.gt.s32.totalorder %v591_v7, 0  ;;  %v642_v19 = vadd.s32 104, %v623_v6  ;;  %v645_v20 = vadd.s32 224, %v623_v6 }
   0x7   :  { %v23_v16 = vadd.s32 1, %v593_v8  ;;  %vm32_vm1 = vcmp.gt.s32.totalorder %v593_v8, 0  ;;  %v29_v17 = vsel %vm28_vm0, %v591_v7, 0  ;;  %v648_v30 = vadd.s32 96, %v623_v6 }
   0x8   :  { %v33_v18 = vsel %vm32_vm1, %v593_v8, 0  ;;  %vm19_vm2 = vcmp.gt.s32.totalorder %v18_v15, 0  ;;  %vm30_vm4 = vcmp.lt.s32.totalorder %v29_v17, 15  ;;  %v651_v34 = vadd.s32 216, %v623_v6 }
   0x9   :  { %vm24_vm3 = vcmp.gt.s32.totalorder %v23_v16, 0  ;;  %vm34_vm5 = vcmp.lt.s32.totalorder %v33_v18, 15  ;;  %v20_v21 = vsel %vm19_vm2, %v18_v15, 0  ;;  %v31_v23 = vsel %vm30_vm4, %v29_v17, 15 }
   0xa   :  { %v25_v22 = vsel %vm24_vm3, %v23_v16, 0  ;;  %v35_v24 = vsel %vm34_vm5, %v33_v18, 15  ;;  %vm21_vm6 = vcmp.lt.s32.totalorder %v20_v21, 15  ;;  %v36_v25 = vcvt.s32.f32 %v31_v23 }
   0xb   :  { %vm26_vm7 = vcmp.lt.s32.totalorder %v25_v22, 15  ;;  %v38_v26 = vcvt.s32.f32 %v35_v24  ;;  %v22_v27 = vsel %vm21_vm6, %v20_v21, 15  ;;  %v79_v29 = vmul.u32 16, %v31_v23 }
   0xc   :  { %v27_v28 = vsel %vm26_vm7, %v25_v22, 15  ;;  %v37_v31 = vsub.f32 %v14_v1, %v36_v25  ;;  %v262_v33 = vmul.u32 16, %v22_v27  ;;  %v654_v37 = vadd.s32 88, %v623_v6 }
   0xd   :  { %v39_v32 = vsub.f32 %v15_v2, %v38_v26  ;;  %v80_v35 = vadd.s32 %v79_v29, %v35_v24  ;;  %v155_v36 = vadd.s32 %v79_v29, %v27_v28  ;;  %v657_v38 = vadd.s32 208, %v623_v6 }
   0xe   :  { %v40_v39 = vsub.f32 1.0, %v37_v31  ;;  %v263_v42 = vadd.s32 %v262_v33, %v35_v24  ;;  %v370_v45 = vadd.s32 %v262_v33, %v27_v28  ;;  %v664_v46 = vadd.s32 80, %v623_v6 }
   0xf   :  { %v41_v40 = vsub.f32 1.0, %v39_v32  ;;  %v45_v41 = vmul.f32 %v39_v32, %v37_v31  ;;  %v659_v43 = vrot.slane %v80_v35, %v83_v10  ;;  %v661_v44 = vrot.slane %v155_v36, %v83_v10 }
  0x10   :  { %v44_v49 = vmul.f32 %v40_v39, %v39_v32  ;;  %v666_v50 = vrot.slane %v263_v42, %v83_v10  ;;  %v672_v51 = vrot.slane %v370_v45, %v83_v10 }
  0x11   :  { %v42_v47 = vmul.f32 %v41_v40, %v40_v39  ;;  %v43_v48 = vmul.f32 %v41_v40, %v37_v31  ;;  %vm116_vm8 = vcmp.eq.s32.totalorder %v626_v9, %v659_v43  ;;  %vm191_vm9 = vcmp.eq.s32.totalorder %v626_v9, %v661_v44 }
  0x12   :  { %v674_v52 = vrot.slane %v45_v41, %v83_v10  ;;  %v678_v54 = vrot.slane %v44_v49, %v83_v10  ;;  %vm299_vm10 = vcmp.eq.s32.totalorder %v626_v9, %v666_v50  ;;  %vm406_vm11 = vcmp.eq.s32.totalorder %v626_v9, %v672_v51 }
  0x13   :  { %v676_v53 = vrot.slane %v42_v47, %v83_v10  ;;  %v682_v55 = vrot.slane %v43_v48, %v83_v10  ;;  %vm100_vm12 = vcmp.eq.s32.totalorder %v630_v11, %v659_v43  ;;  %vm175_vm13 = vcmp.eq.s32.totalorder %v630_v11, %v661_v44 }
  0x14   :  { %vm283_vm14 = vcmp.eq.s32.totalorder %v630_v11, %v666_v50  ;;  %v229_v57 = vsel %vm191_vm9, %v678_v54, 0.0  ;;  %v444_v59 = vsel %vm406_vm11, %v674_v52, 0.0  ;;  %v213_v62 = vsel %vm175_vm13, %v678_v54, 0.0 }
  0x15   :  { %v154_v56 = vsel %vm116_vm8, %v676_v53, 0.0  ;;  %v337_v58 = vsel %vm299_vm10, %v682_v55, 0.0  ;;  %v138_v61 = vsel %vm100_vm12, %v676_v53, 0.0  ;;  %v321_v63 = vsel %vm283_vm14, %v682_v55, 0.0 }
  0x16   :  { %v261_v60 = vadd.f32 %v229_v57, %v154_v56  ;;  %v245_v0 = vadd.f32 %v213_v62, %v138_v61  ;;  %vm390_vm15 = vcmp.eq.s32.totalorder %v630_v11, %v672_v51  ;;  %vm115_vm0 = vcmp.eq.s32.totalorder %v633_v12, %v659_v43 }
  0x17   :  { %vm190_vm1 = vcmp.eq.s32.totalorder %v633_v12, %v661_v44  ;;  %v428_v2 = vsel %vm390_vm15, %v674_v52, 0.0  ;;  %v153_v3 = vsel %vm115_vm0, %v676_v53, 0.0  ;;  %vm298_vm2 = vcmp.eq.s32.totalorder %v633_v12, %v666_v50 }
  0x18   :  { %v369_v1 = vadd.f32 %v337_v58, %v261_v60  ;;  %v228_v4 = vsel %vm190_vm1, %v678_v54, 0.0  ;;  %v353_v5 = vadd.f32 %v321_v63, %v245_v0  ;;  %vm405_vm3 = vcmp.eq.s32.totalorder %v633_v12, %v672_v51 }
  0x19   :  { %v260_v7 = vadd.f32 %v228_v4, %v153_v3  ;;  %v336_v9 = vsel %vm298_vm2, %v682_v55, 0.0  ;;  %v443_v10 = vsel %vm405_vm3, %v674_v52, 0.0  ;;  %vm99_vm4 = vcmp.eq.s32.totalorder %v636_v13, %v659_v43 }
  0x1a   :  { %v476_v8 = vadd.f32 %v444_v59, %v369_v1  ;;  %v460_v11 = vadd.f32 %v428_v2, %v353_v5  ;;  %v137_v16 = vsel %vm99_vm4, %v676_v53, 0.0  ;;  %vm174_vm5 = vcmp.eq.s32.totalorder %v636_v13, %v661_v44 }
  0x1b   :  { %v368_v15 = vadd.f32 %v336_v9, %v260_v7  ;;  %v212_v17 = vsel %vm174_vm5, %v678_v54, 0.0  ;;  %vm282_vm6 = vcmp.eq.s32.totalorder %v636_v13, %v666_v50  ;;  %vm389_vm7 = vcmp.eq.s32.totalorder %v636_v13, %v672_v51 }
  0x1c   :  { %555 = vmatprep.subr.mxu0 %v476_v8  ;;  %vm114_vm8 = vcmp.eq.s32.totalorder %v639_v14, %v659_v43  ;;  %v244_v18 = vadd.f32 %v212_v17, %v137_v16  ;;  %v320_v21 = vsel %vm282_vm6, %v682_v55, 0.0  ;;  %v427_v22 = vsel %vm389_vm7, %v674_v52, 0.0 }
  0x1d   :  { %556 = vmatpush3.msra.mxu0 %v460_v11  ;;  %v475_v12 = vadd.f32 %v443_v10, %v368_v15  ;;  %v152_v23 = vsel %vm114_vm8, %v676_v53, 0.0  ;;  %vm189_vm9 = vcmp.eq.s32.totalorder %v639_v14, %v661_v44  ;;  %vm297_vm10 = vcmp.eq.s32.totalorder %v639_v14, %v666_v50 }
  0x1e   :  { %vm404_vm11 = vcmp.eq.s32.totalorder %v639_v14, %v672_v51  ;;  %v352_v13 = vadd.f32 %v320_v21, %v244_v18  ;;  %v227_v24 = vsel %vm189_vm9, %v678_v54, 0.0  ;;  %v335_v25 = vsel %vm297_vm10, %v682_v55, 0.0 }
  0x1f   :  { %557 = vmatprep.subr.mxu0 %v475_v12  ;;  %v442_v26 = vsel %vm404_vm11, %v674_v52, 0.0  ;;  %v259_v27 = vadd.f32 %v227_v24, %v152_v23  ;;  %vm98_vm12 = vcmp.eq.s32.totalorder %v642_v19, %v659_v43  ;;  %vm173_vm13 = vcmp.eq.s32.totalorder %v642_v19, %v661_v44 }
  0x20   :  { %vm281_vm14 = vcmp.eq.s32.totalorder %v642_v19, %v666_v50  ;;  %v459_v28 = vadd.f32 %v427_v22, %v352_v13  ;;  %v136_v14 = vsel %vm98_vm12, %v676_v53, 0.0  ;;  %v211_v29 = vsel %vm173_vm13, %v678_v54, 0.0 }
  0x21   :  { %v319_v31 = vsel %vm281_vm14, %v682_v55, 0.0  ;;  %v367_v32 = vadd.f32 %v335_v25, %v259_v27  ;;  %v243_v33 = vadd.f32 %v211_v29, %v136_v14  ;;  %vm388_vm15 = vcmp.eq.s32.totalorder %v642_v19, %v672_v51 }
  0x22   :  { %vm113_vm0 = vcmp.eq.s32.totalorder %v645_v20, %v659_v43  ;;  %558 = vmatpush3.msra.mxu0 %v459_v28  ;;  %v426_v35 = vsel %vm388_vm15, %v674_v52, 0.0  ;;  %vm188_vm1 = vcmp.eq.s32.totalorder %v645_v20, %v661_v44  ;;  %vm296_vm2 = vcmp.eq.s32.totalorder %v645_v20, %v666_v50 }
  0x23   :  { %v151_v36 = vsel %vm113_vm0, %v676_v53, 0.0  ;;  %v474_v39 = vadd.f32 %v442_v26, %v367_v32  ;;  %v351_v40 = vadd.f32 %v319_v31, %v243_v33  ;;  %v226_v41 = vsel %vm188_vm1, %v678_v54, 0.0 }
  0x24   :  { %v334_v19 = vsel %vm296_vm2, %v682_v55, 0.0  ;;  %v258_v42 = vadd.f32 %v226_v41, %v151_v36  ;;  %vm403_vm3 = vcmp.eq.s32.totalorder %v645_v20, %v672_v51  ;;  %vm97_vm4 = vcmp.eq.s32.totalorder %v648_v30, %v659_v43 }
  0x25   :  { %vm172_vm5 = vcmp.eq.s32.totalorder %v648_v30, %v661_v44  ;;  %559 = vmatprep.subr.mxu0 %v474_v39  ;;  %v458_v45 = vadd.f32 %v426_v35, %v351_v40  ;;  %v441_v47 = vsel %vm403_vm3, %v674_v52, 0.0  ;;  %v135_v48 = vsel %vm97_vm4, %v676_v53, 0.0 }
  0x26   :  { %v210_v49 = vsel %vm172_vm5, %v678_v54, 0.0  ;;  %v366_v56 = vadd.f32 %v334_v19, %v258_v42  ;;  %vm280_vm6 = vcmp.eq.s32.totalorder %v648_v30, %v666_v50  ;;  %vm387_vm7 = vcmp.eq.s32.totalorder %v648_v30, %v672_v51 }
  0x27   :  { %v242_v57 = vadd.f32 %v210_v49, %v135_v48  ;;  %560 = vmatpush3.msra.mxu0 %v458_v45  ;;  %v318_v20 = vsel %vm280_vm6, %v682_v55, 0.0  ;;  %v425_v58 = vsel %vm387_vm7, %v674_v52, 0.0  ;;  %vm112_vm8 = vcmp.eq.s32.totalorder %v651_v34, %v659_v43 }
  0x28   :  { %vm187_vm9 = vcmp.eq.s32.totalorder %v651_v34, %v661_v44  ;;  %v473_v59 = vadd.f32 %v441_v47, %v366_v56  ;;  %v150_v61 = vsel %vm112_vm8, %v676_v53, 0.0  ;;  %vm295_vm10 = vcmp.eq.s32.totalorder %v651_v34, %v666_v50 }
  0x29   :  { %v350_v60 = vadd.f32 %v318_v20, %v242_v57  ;;  %v225_v62 = vsel %vm187_vm9, %v678_v54, 0.0  ;;  %vm402_vm11 = vcmp.eq.s32.totalorder %v651_v34, %v672_v51  ;;  %vm96_vm12 = vcmp.eq.s32.totalorder %v654_v37, %v659_v43 }
  0x2a   :  { %v257_v63 = vadd.f32 %v225_v62, %v150_v61  ;;  %561 = vmatprep.subr.mxu0 %v473_v59  ;;  %v333_v0 = vsel %vm295_vm10, %v682_v55, 0.0  ;;  %v440_v1 = vsel %vm402_vm11, %v674_v52, 0.0  ;;  %v134_v2 = vsel %vm96_vm12, %v676_v53, 0.0 }
  0x2b   :  { %v457_v30 = vadd.f32 %v425_v58, %v350_v60  ;;  %vm171_vm13 = vcmp.eq.s32.totalorder %v654_v37, %v661_v44  ;;  %vm279_vm14 = vcmp.eq.s32.totalorder %v654_v37, %v666_v50  ;;  %vm386_vm15 = vcmp.eq.s32.totalorder %v654_v37, %v672_v51 }
  0x2c   :  { %v365_v3 = vadd.f32 %v333_v0, %v257_v63  ;;  %v209_v34 = vsel %vm171_vm13, %v678_v54, 0.0  ;;  %v317_v4 = vsel %vm279_vm14, %v682_v55, 0.0  ;;  %v424_v5 = vsel %vm386_vm15, %v674_v52, 0.0 }
  0x2d   :  { %562 = vmatpush3.msra.mxu0 %v457_v30  ;;  %vm111_vm0 = vcmp.eq.s32.totalorder %v657_v38, %v659_v43  ;;  %v241_v8 = vadd.f32 %v209_v34, %v134_v2  ;;  %vm186_vm1 = vcmp.eq.s32.totalorder %v657_v38, %v661_v44  ;;  %vm294_vm2 = vcmp.eq.s32.totalorder %v657_v38, %v666_v50 }
  0x2e   :  { %v472_v7 = vadd.f32 %v440_v1, %v365_v3  ;;  %v149_v9 = vsel %vm111_vm0, %v676_v53, 0.0  ;;  %v224_v10 = vsel %vm186_vm1, %v678_v54, 0.0  ;;  %vm401_vm3 = vcmp.eq.s32.totalorder %v657_v38, %v672_v51 }
  0x2f   :  { %vm95_vm4 = vcmp.eq.s32.totalorder %v664_v46, %v659_v43  ;;  %v349_v37 = vadd.f32 %v317_v4, %v241_v8  ;;  %v256_v11 = vadd.f32 %v224_v10, %v149_v9  ;;  %v332_v15 = vsel %vm294_vm2, %v682_v55, 0.0 }
  0x30   :  { %563 = vmatprep.subr.mxu0 %v472_v7  ;;  %v439_v16 = vsel %vm401_vm3, %v674_v52, 0.0  ;;  %v133_v17 = vsel %vm95_vm4, %v676_v53, 0.0  ;;  %vm170_vm5 = vcmp.eq.s32.totalorder %v664_v46, %v661_v44  ;;  %vm278_vm6 = vcmp.eq.s32.totalorder %v664_v46, %v666_v50 }
  0x31   :  { %vm385_vm7 = vcmp.eq.s32.totalorder %v664_v46, %v672_v51  ;;  %v456_v38 = vadd.f32 %v424_v5, %v349_v37  ;;  %v364_v12 = vadd.f32 %v332_v15, %v256_v11  ;;  %v208_v18 = vsel %vm170_vm5, %v678_v54, 0.0 }
  0x32   :  { %v316_v21 = vsel %vm278_vm6, %v682_v55, 0.0  ;;  %v240_v22 = vadd.f32 %v208_v18, %v133_v17  ;;  %v423_v23 = vsel %vm385_vm7, %v674_v52, 0.0  ;;  %v72_v13 = vadd.s32 200, %v623_v6 }
  0x33   :  { %v56_v24 = vadd.s32 72, %v623_v6  ;;  %564 = vmatpush3.msra.mxu0 %v456_v38  ;;  %v471_v25 = vadd.f32 %v439_v16, %v364_v12  ;;  %v71_v26 = vadd.s32 192, %v623_v6  ;;  %v55_v27 = vadd.s32 64, %v623_v6 }
  0x34   :  { %v70_v46 = vadd.s32 184, %v623_v6  ;;  %v348_v28 = vadd.f32 %v316_v21, %v240_v22  ;;  %vm110_vm8 = vcmp.eq.s32.totalorder %v72_v13, %v659_v43  ;;  %vm185_vm9 = vcmp.eq.s32.totalorder %v72_v13, %v661_v44 }
  0x35   :  { %vm293_vm10 = vcmp.eq.s32.totalorder %v72_v13, %v666_v50  ;;  %565 = vmatprep.subr.mxu0 %v471_v25  ;;  %v148_v14 = vsel %vm110_vm8, %v676_v53, 0.0  ;;  %v223_v29 = vsel %vm185_vm9, %v678_v54, 0.0  ;;  %vm400_vm11 = vcmp.eq.s32.totalorder %v72_v13, %v672_v51 }
  0x36   :  { %v331_v31 = vsel %vm293_vm10, %v682_v55, 0.0  ;;  %v455_v32 = vadd.f32 %v423_v23, %v348_v28  ;;  %v255_v33 = vadd.f32 %v223_v29, %v148_v14  ;;  %v438_v35 = vsel %vm400_vm11, %v674_v52, 0.0 }
  0x37   :  { %vm94_vm12 = vcmp.eq.s32.totalorder %v56_v24, %v659_v43  ;;  %vm169_vm13 = vcmp.eq.s32.totalorder %v56_v24, %v661_v44  ;;  %vm277_vm14 = vcmp.eq.s32.totalorder %v56_v24, %v666_v50  ;;  %vm384_vm15 = vcmp.eq.s32.totalorder %v56_v24, %v672_v51 }
  0x38   :  { %v132_v36 = vsel %vm94_vm12, %v676_v53, 0.0  ;;  %566 = vmatpush3.msra.mxu0 %v455_v32  ;;  %v363_v39 = vadd.f32 %v331_v31, %v255_v33  ;;  %v207_v40 = vsel %vm169_vm13, %v678_v54, 0.0  ;;  %v315_v41 = vsel %vm277_vm14, %v682_v55, 0.0 }
  0x39   :  { %v422_v19 = vsel %vm384_vm15, %v674_v52, 0.0  ;;  %v239_v42 = vadd.f32 %v207_v40, %v132_v36  ;;  %vm109_vm0 = vcmp.eq.s32.totalorder %v71_v26, %v659_v43  ;;  %vm184_vm1 = vcmp.eq.s32.totalorder %v71_v26, %v661_v44 }
  0x3a   :  { %vm292_vm2 = vcmp.eq.s32.totalorder %v71_v26, %v666_v50  ;;  %v470_v45 = vadd.f32 %v438_v35, %v363_v39  ;;  %v147_v47 = vsel %vm109_vm0, %v676_v53, 0.0  ;;  %v222_v48 = vsel %vm184_vm1, %v678_v54, 0.0 }
  0x3b   :  { %v330_v49 = vsel %vm292_vm2, %v682_v55, 0.0  ;;  %v347_v56 = vadd.f32 %v315_v41, %v239_v42  ;;  %v254_v57 = vadd.f32 %v222_v48, %v147_v47  ;;  %vm399_vm3 = vcmp.eq.s32.totalorder %v71_v26, %v672_v51 }
  0x3c   :  { %vm93_vm4 = vcmp.eq.s32.totalorder %v55_v27, %v659_v43  ;;  %567 = vmatprep.subr.mxu0 %v470_v45  ;;  %v437_v20 = vsel %vm399_vm3, %v674_v52, 0.0  ;;  %vm168_vm5 = vcmp.eq.s32.totalorder %v55_v27, %v661_v44  ;;  %vm276_vm6 = vcmp.eq.s32.totalorder %v55_v27, %v666_v50 }
  0x3d   :  { %v131_v58 = vsel %vm93_vm4, %v676_v53, 0.0  ;;  %v454_v59 = vadd.f32 %v422_v19, %v347_v56  ;;  %v362_v60 = vadd.f32 %v330_v49, %v254_v57  ;;  %v206_v61 = vsel %vm168_vm5, %v678_v54, 0.0 }
  0x3e   :  { %v314_v62 = vsel %vm276_vm6, %v682_v55, 0.0  ;;  %v238_v63 = vadd.f32 %v206_v61, %v131_v58  ;;  %vm383_vm7 = vcmp.eq.s32.totalorder %v55_v27, %v672_v51  ;;  %vm108_vm8 = vcmp.eq.s32.totalorder %v70_v46, %v659_v43 }
  0x3f   :  { %vm183_vm9 = vcmp.eq.s32.totalorder %v70_v46, %v661_v44  ;;  %568 = vmatpush3.msra.mxu0 %v454_v59  ;;  %v469_v30 = vadd.f32 %v437_v20, %v362_v60  ;;  %v421_v0 = vsel %vm383_vm7, %v674_v52, 0.0  ;;  %v146_v1 = vsel %vm108_vm8, %v676_v53, 0.0 }
  0x40   :  { %v221_v2 = vsel %vm183_vm9, %v678_v54, 0.0  ;;  %v346_v3 = vadd.f32 %v314_v62, %v238_v63  ;;  %vm291_vm10 = vcmp.eq.s32.totalorder %v70_v46, %v666_v50  ;;  %vm398_vm11 = vcmp.eq.s32.totalorder %v70_v46, %v672_v51 }
  0x41   :  { %v253_v34 = vadd.f32 %v221_v2, %v146_v1  ;;  %569 = vmatprep.subr.mxu0 %v469_v30  ;;  %v329_v4 = vsel %vm291_vm10, %v682_v55, 0.0  ;;  %v436_v5 = vsel %vm398_vm11, %v674_v52, 0.0  ;;  %v54_v7 = vadd.s32 56, %v623_v6 }
  0x42   :  { %v69_v8 = vadd.s32 176, %v623_v6  ;;  %v453_v9 = vadd.f32 %v421_v0, %v346_v3  ;;  %v53_v37 = vadd.s32 48, %v623_v6  ;;  %v68_v11 = vadd.s32 168, %v623_v6 }
  0x43   :  { %v361_v10 = vadd.f32 %v329_v4, %v253_v34  ;;  %vm92_vm12 = vcmp.eq.s32.totalorder %v54_v7, %v659_v43  ;;  %vm167_vm13 = vcmp.eq.s32.totalorder %v54_v7, %v661_v44  ;;  %vm275_vm14 = vcmp.eq.s32.totalorder %v54_v7, %v666_v50 }
  0x44   :  { %vm382_vm15 = vcmp.eq.s32.totalorder %v54_v7, %v672_v51  ;;  %570 = vmatpush3.msra.mxu0 %v453_v9  ;;  %v130_v16 = vsel %vm92_vm12, %v676_v53, 0.0  ;;  %v205_v17 = vsel %vm167_vm13, %v678_v54, 0.0  ;;  %v313_v38 = vsel %vm275_vm14, %v682_v55, 0.0 }
  0x45   :  { %v468_v15 = vadd.f32 %v436_v5, %v361_v10  ;;  %v237_v12 = vadd.f32 %v205_v17, %v130_v16  ;;  %v420_v18 = vsel %vm382_vm15, %v674_v52, 0.0  ;;  %vm107_vm0 = vcmp.eq.s32.totalorder %v69_v8, %v659_v43 }
  0x46   :  { %vm182_vm1 = vcmp.eq.s32.totalorder %v69_v8, %v661_v44  ;;  %v145_v21 = vsel %vm107_vm0, %v676_v53, 0.0  ;;  %vm290_vm2 = vcmp.eq.s32.totalorder %v69_v8, %v666_v50  ;;  %vm397_vm3 = vcmp.eq.s32.totalorder %v69_v8, %v672_v51 }
  0x47   :  { %571 = vmatprep.subr.mxu0 %v468_v15  ;;  %v220_v22 = vsel %vm182_vm1, %v678_v54, 0.0  ;;  %v345_v23 = vadd.f32 %v313_v38, %v237_v12  ;;  %v328_v24 = vsel %vm290_vm2, %v682_v55, 0.0  ;;  %v435_v25 = vsel %vm397_vm3, %v674_v52, 0.0 }
  0x48   :  { %v252_v13 = vadd.f32 %v220_v22, %v145_v21  ;;  %vm91_vm4 = vcmp.eq.s32.totalorder %v53_v37, %v659_v43  ;;  %vm166_vm5 = vcmp.eq.s32.totalorder %v53_v37, %v661_v44  ;;  %vm274_vm6 = vcmp.eq.s32.totalorder %v53_v37, %v666_v50 }
  0x49   :  { %vm381_vm7 = vcmp.eq.s32.totalorder %v53_v37, %v672_v51  ;;  %v452_v26 = vadd.f32 %v420_v18, %v345_v23  ;;  %v129_v46 = vsel %vm91_vm4, %v676_v53, 0.0  ;;  %v204_v28 = vsel %vm166_vm5, %v678_v54, 0.0 }
  0x4a   :  { %v360_v27 = vadd.f32 %v328_v24, %v252_v13  ;;  %v236_v14 = vadd.f32 %v204_v28, %v129_v46  ;;  %v312_v29 = vsel %vm274_vm6, %v682_v55, 0.0  ;;  %v419_v31 = vsel %vm381_vm7, %v674_v52, 0.0 }
  0x4b   :  { %vm106_vm8 = vcmp.eq.s32.totalorder %v68_v11, %v659_v43  ;;  %572 = vmatpush3.msra.mxu0 %v452_v26  ;;  %vm181_vm9 = vcmp.eq.s32.totalorder %v68_v11, %v661_v44  ;;  %vm289_vm10 = vcmp.eq.s32.totalorder %v68_v11, %v666_v50  ;;  %vm396_vm11 = vcmp.eq.s32.totalorder %v68_v11, %v672_v51 }
  0x4c   :  { %v467_v32 = vadd.f32 %v435_v25, %v360_v27  ;;  %v144_v33 = vsel %vm106_vm8, %v676_v53, 0.0  ;;  %v344_v35 = vadd.f32 %v312_v29, %v236_v14  ;;  %v219_v36 = vsel %vm181_vm9, %v678_v54, 0.0 }
  0x4d   :  { %v327_v39 = vsel %vm289_vm10, %v682_v55, 0.0  ;;  %v251_v40 = vadd.f32 %v219_v36, %v144_v33  ;;  %v434_v41 = vsel %vm396_vm11, %v674_v52, 0.0  ;;  %v52_v19 = vadd.s32 40, %v623_v6 }
  0x4e   :  { %573 = vmatprep.subr.mxu0 %v467_v32  ;;  %v67_v42 = vadd.s32 160, %v623_v6  ;;  %v451_v45 = vadd.f32 %v419_v31, %v344_v35  ;;  %v51_v47 = vadd.s32 32, %v623_v6  ;;  %v66_v48 = vadd.s32 152, %v623_v6 }
  0x4f   :  { %v50_v49 = vadd.s32 24, %v623_v6  ;;  %v359_v56 = vadd.f32 %v327_v39, %v251_v40  ;;  %vm90_vm12 = vcmp.eq.s32.totalorder %v52_v19, %v659_v43  ;;  %vm165_vm13 = vcmp.eq.s32.totalorder %v52_v19, %v661_v44 }
  0x50   :  { %vm273_vm14 = vcmp.eq.s32.totalorder %v52_v19, %v666_v50  ;;  %574 = vmatpush3.msra.mxu0 %v451_v45  ;;  %v128_v57 = vsel %vm90_vm12, %v676_v53, 0.0  ;;  %v203_v20 = vsel %vm165_vm13, %v678_v54, 0.0  ;;  %vm380_vm15 = vcmp.eq.s32.totalorder %v52_v19, %v672_v51 }
  0x51   :  { %v311_v58 = vsel %vm273_vm14, %v682_v55, 0.0  ;;  %v466_v59 = vadd.f32 %v434_v41, %v359_v56  ;;  %v235_v60 = vadd.f32 %v203_v20, %v128_v57  ;;  %v418_v61 = vsel %vm380_vm15, %v674_v52, 0.0 }
  0x52   :  { %vm105_vm0 = vcmp.eq.s32.totalorder %v67_v42, %v659_v43  ;;  %vm180_vm1 = vcmp.eq.s32.totalorder %v67_v42, %v661_v44  ;;  %vm288_vm2 = vcmp.eq.s32.totalorder %v67_v42, %v666_v50  ;;  %vm395_vm3 = vcmp.eq.s32.totalorder %v67_v42, %v672_v51 }
  0x53   :  { %v143_v62 = vsel %vm105_vm0, %v676_v53, 0.0  ;;  %575 = vmatprep.subr.mxu0 %v466_v59  ;;  %v343_v63 = vadd.f32 %v311_v58, %v235_v60  ;;  %v218_v30 = vsel %vm180_vm1, %v678_v54, 0.0  ;;  %v326_v0 = vsel %vm288_vm2, %v682_v55, 0.0 }
  0x54   :  { %v433_v1 = vsel %vm395_vm3, %v674_v52, 0.0  ;;  %v250_v2 = vadd.f32 %v218_v30, %v143_v62  ;;  %vm89_vm4 = vcmp.eq.s32.totalorder %v51_v47, %v659_v43  ;;  %vm164_vm5 = vcmp.eq.s32.totalorder %v51_v47, %v661_v44 }
  0x55   :  { %vm272_vm6 = vcmp.eq.s32.totalorder %v51_v47, %v666_v50  ;;  %v450_v3 = vadd.f32 %v418_v61, %v343_v63  ;;  %v127_v34 = vsel %vm89_vm4, %v676_v53, 0.0  ;;  %v202_v4 = vsel %vm164_vm5, %v678_v54, 0.0 }
  0x56   :  { %v310_v5 = vsel %vm272_vm6, %v682_v55, 0.0  ;;  %v358_v7 = vadd.f32 %v326_v0, %v250_v2  ;;  %v234_v8 = vadd.f32 %v202_v4, %v127_v34  ;;  %vm379_vm7 = vcmp.eq.s32.totalorder %v51_v47, %v672_v51 }
  0x57   :  { %vm104_vm8 = vcmp.eq.s32.totalorder %v66_v48, %v659_v43  ;;  %576 = vmatpush3.msra.mxu0 %v450_v3  ;;  %v417_v9 = vsel %vm379_vm7, %v674_v52, 0.0  ;;  %vm179_vm9 = vcmp.eq.s32.totalorder %v66_v48, %v661_v44  ;;  %vm287_vm10 = vcmp.eq.s32.totalorder %v66_v48, %v666_v50 }
  0x58   :  { %v142_v10 = vsel %vm104_vm8, %v676_v53, 0.0  ;;  %v465_v37 = vadd.f32 %v433_v1, %v358_v7  ;;  %v342_v11 = vadd.f32 %v310_v5, %v234_v8  ;;  %v217_v15 = vsel %vm179_vm9, %v678_v54, 0.0 }
  0x59   :  { %v325_v16 = vsel %vm287_vm10, %v682_v55, 0.0  ;;  %v249_v17 = vadd.f32 %v217_v15, %v142_v10  ;;  %vm394_vm11 = vcmp.eq.s32.totalorder %v66_v48, %v672_v51  ;;  %vm88_vm12 = vcmp.eq.s32.totalorder %v50_v49, %v659_v43 }
  0x5a   :  { %vm163_vm13 = vcmp.eq.s32.totalorder %v50_v49, %v661_v44  ;;  %577 = vmatprep.subr.mxu0 %v465_v37  ;;  %v449_v38 = vadd.f32 %v417_v9, %v342_v11  ;;  %v432_v12 = vsel %vm394_vm11, %v674_v52, 0.0  ;;  %v126_v18 = vsel %vm88_vm12, %v676_v53, 0.0 }
  0x5b   :  { %v201_v21 = vsel %vm163_vm13, %v678_v54, 0.0  ;;  %v357_v22 = vadd.f32 %v325_v16, %v249_v17  ;;  %vm271_vm14 = vcmp.eq.s32.totalorder %v50_v49, %v666_v50  ;;  %vm378_vm15 = vcmp.eq.s32.totalorder %v50_v49, %v672_v51  ;;  %v477_v17 = vld [vmem:[%s1013_s0] sm:$0xff] }
  0x5c   :  { %v233_v23 = vadd.f32 %v201_v21, %v126_v18  ;;  %578 = vmatpush3.msra.mxu0 %v449_v38  ;;  %v309_v13 = vsel %vm271_vm14, %v682_v55, 0.0  ;;  %v416_v24 = vsel %vm378_vm15, %v674_v52, 0.0  ;;  %v65_v25 = vadd.s32 144, %v623_v6 }
  0x5d   :  { %v49_v26 = vadd.s32 16, %v623_v6  ;;  %v464_v27 = vadd.f32 %v432_v12, %v357_v22  ;;  %v64_v28 = vadd.s32 136, %v623_v6  ;;  %v48_v14 = vadd.s32 8, %v623_v6 }
  0x5e   :  { %v341_v46 = vadd.f32 %v309_v13, %v233_v23  ;;  %vm103_vm0 = vcmp.eq.s32.totalorder %v65_v25, %v659_v43  ;;  %vm178_vm1 = vcmp.eq.s32.totalorder %v65_v25, %v661_v44  ;;  %vm286_vm2 = vcmp.eq.s32.totalorder %v65_v25, %v666_v50 }
  0x5f   :  { %vm393_vm3 = vcmp.eq.s32.totalorder %v65_v25, %v672_v51  ;;  %579 = vmatprep.subr.mxu0 %v464_v27  ;;  %v141_v31 = vsel %vm103_vm0, %v676_v53, 0.0  ;;  %v216_v32 = vsel %vm178_vm1, %v678_v54, 0.0  ;;  %v324_v33 = vsel %vm286_vm2, %v682_v55, 0.0 }
  0x60   :  { %v448_v29 = vadd.f32 %v416_v24, %v341_v46  ;;  %v248_v35 = vadd.f32 %v216_v32, %v141_v31  ;;  %v431_v36 = vsel %vm393_vm3, %v674_v52, 0.0  ;;  %vm87_vm4 = vcmp.eq.s32.totalorder %v49_v26, %v659_v43 }
  0x61   :  { %vm162_vm5 = vcmp.eq.s32.totalorder %v49_v26, %v661_v44  ;;  %v125_v39 = vsel %vm87_vm4, %v676_v53, 0.0  ;;  %vm270_vm6 = vcmp.eq.s32.totalorder %v49_v26, %v666_v50  ;;  %vm377_vm7 = vcmp.eq.s32.totalorder %v49_v26, %v672_v51 }
  0x62   :  { %580 = vmatpush3.msra.mxu0 %v448_v29  ;;  %v200_v40 = vsel %vm162_vm5, %v678_v54, 0.0  ;;  %v356_v41 = vadd.f32 %v324_v33, %v248_v35  ;;  %v308_v42 = vsel %vm270_vm6, %v682_v55, 0.0  ;;  %v415_v45 = vsel %vm377_vm7, %v674_v52, 0.0 }
  0x63   :  { %v232_v19 = vadd.f32 %v200_v40, %v125_v39  ;;  %vm102_vm8 = vcmp.eq.s32.totalorder %v64_v28, %v659_v43  ;;  %vm177_vm9 = vcmp.eq.s32.totalorder %v64_v28, %v661_v44  ;;  %vm285_vm10 = vcmp.eq.s32.totalorder %v64_v28, %v666_v50 }
  0x64   :  { %vm392_vm11 = vcmp.eq.s32.totalorder %v64_v28, %v672_v51  ;;  %v463_v47 = vadd.f32 %v431_v36, %v356_v41  ;;  %v140_v49 = vsel %vm102_vm8, %v676_v53, 0.0  ;;  %v215_v56 = vsel %vm177_vm9, %v678_v54, 0.0 }
  0x65   :  { %v340_v48 = vadd.f32 %v308_v42, %v232_v19  ;;  %v247_v57 = vadd.f32 %v215_v56, %v140_v49  ;;  %v323_v20 = vsel %vm285_vm10, %v682_v55, 0.0  ;;  %v430_v58 = vsel %vm392_vm11, %v674_v52, 0.0 }
  0x66   :  { %vm86_vm12 = vcmp.eq.s32.totalorder %v48_v14, %v659_v43  ;;  %581 = vmatprep.subr.mxu0 %v463_v47  ;;  %vm161_vm13 = vcmp.eq.s32.totalorder %v48_v14, %v661_v44  ;;  %vm269_vm14 = vcmp.eq.s32.totalorder %v48_v14, %v666_v50  ;;  %vm376_vm15 = vcmp.eq.s32.totalorder %v48_v14, %v672_v51 }
  0x67   :  { %v447_v59 = vadd.f32 %v415_v45, %v340_v48  ;;  %v124_v60 = vsel %vm86_vm12, %v676_v53, 0.0  ;;  %v355_v61 = vadd.f32 %v323_v20, %v247_v57  ;;  %v199_v62 = vsel %vm161_vm13, %v678_v54, 0.0 }
  0x68   :  { %v307_v63 = vsel %vm269_vm14, %v682_v55, 0.0  ;;  %v231_v30 = vadd.f32 %v199_v62, %v124_v60  ;;  %v414_v0 = vsel %vm376_vm15, %v674_v52, 0.0  ;;  %v63_v1 = vadd.s32 128, %v623_v6 }
  0x69   :  { %582 = vmatpush3.msra.mxu0 %v447_v59  ;;  %vm85_vm0 = vcmp.eq.s32.totalorder %v623_v6, %v659_v43  ;;  %v462_v2 = vadd.f32 %v430_v58, %v355_v61  ;;  %vm160_vm1 = vcmp.eq.s32.totalorder %v623_v6, %v661_v44  ;;  %vm268_vm2 = vcmp.eq.s32.totalorder %v623_v6, %v666_v50 }
  0x6a   :  { %v123_v3 = vsel %vm85_vm0, %v676_v53, 0.0  ;;  %v339_v34 = vadd.f32 %v307_v63, %v231_v30  ;;  %vm101_vm3 = vcmp.eq.s32.totalorder %v63_v1, %v659_v43  ;;  %vm176_vm4 = vcmp.eq.s32.totalorder %v63_v1, %v661_v44 }
  0x6b   :  { %vm284_vm5 = vcmp.eq.s32.totalorder %v63_v1, %v666_v50  ;;  %583 = vmatprep.subr.mxu0 %v462_v2  ;;  %v139_v4 = vsel %vm101_vm3, %v676_v53, 0.0  ;;  %v214_v5 = vsel %vm176_vm4, %v678_v54, 0.0  ;;  %vm391_vm6 = vcmp.eq.s32.totalorder %v63_v1, %v672_v51 }
  0x6c   :  { %v322_v7 = vsel %vm284_vm5, %v682_v55, 0.0  ;;  %v446_v8 = vadd.f32 %v414_v0, %v339_v34  ;;  %v246_v9 = vadd.f32 %v214_v5, %v139_v4  ;;  %v198_v10 = vsel %vm160_vm1, %v678_v54, 0.0 }
  0x6d   :  { %v429_v37 = vsel %vm391_vm6, %v674_v52, 0.0  ;;  %v230_v43 = vadd.f32 %v198_v10, %v123_v3  ;;  %v306_v44 = vsel %vm268_vm2, %v682_v55, 0.0  ;;  %vm375_vm7 = vcmp.eq.s32.totalorder %v623_v6, %v672_v51 }
  0x6e   :  { %584 = vmatpush3.msra.mxu0 %v446_v8  ;;  %v354_v50 = vadd.f32 %v322_v7, %v246_v9  ;;  %v413_v53 = vsel %vm375_vm7, %v674_v52, 0.0  ;;  %vm549_vm8 = vcmask 261120  }
  0x6f   :  { %v338_v11 = vadd.f32 %v306_v44, %v230_v43 }
  0x70   :  { %v461_v15 = vadd.f32 %v429_v37, %v354_v50 }
  0x71   :  { %v445_v16 = vadd.f32 %v413_v53, %v338_v11 }
  0x72   :  { %585 = vmatprep.subr.mxu0 %v461_v15 }
  0x73   :  { %586 = vmatpush3.msra.mxu0 %v445_v16 }
  0x74   :  { %544 = vmatmul.mubr.f32.vlgmr.msra.gmra.mxu0 %v477_v17 }
 0x134   :  { %v587_v54 = vpop.f32.mrf.mxu0 }
 0x136   :  { %v588_v38 = vpop.f32.mrf.mxu0 }
 0x137   :  { %v589_v55 = vadd.f32 %v588_v38, %v587_v54 }
 0x139   :  { %550 = vst.msk [vmem:[%s1014_s3] sm:$0xff] %vm549_vm8, %v589_v55 }

// kernel: feature_aggregation_forward.3
= control target key start
LH: loop header
LB: loop body
LE: loop exit
PB: predicated region body
PF: predicated region fallthrough
CT: control target
= control target key end

     0   :  { %s2473_s0 = inlined_call_operand.vmem [shape: f32[32,8], index: 0, kind: input, shape index: {}]   ;;  %s2474_s1 = inlined_call_operand.vmem [shape: f32[32,2], index: 1, kind: input, shape index: {}]   ;;  %s2475_s2 = inlined_call_operand.vmem [shape: f32[4,3], index: 2, kind: input, shape index: {}]   ;;  %s2476_s3 = inlined_call_operand.vmem [shape: f32[4,8], index: 3, kind: input, shape index: {}]   ;;  %s2477_s4 = inlined_call_operand.vmem [shape: f32[2,8], index: 4, kind: input, shape index: {}]   ;;  %s2478_s5 = inlined_call_operand.vmem [shape: f32[1,8], index: 5, kind: input, shape index: {}]   ;;  %s2479_s6 = inlined_call_operand.vmem [shape: f32[3,8], index: 6, kind: input, shape index: {}]   ;;  %s2480_s7 = inlined_call_operand.vmem [shape: f32[1,8], index: 7, kind: input, shape index: {}]   ;;  %s2481_s8 = inlined_call_operand.vmem [shape: f32[2,8,8], index: 8, kind: input, shape index: {}]   ;;  %s2482_s9 = inlined_call_operand.vmem [shape: f32[2,8,8], index: 9, kind: input, shape index: {}]   ;;  %s2483_s10 = inlined_call_operand.vmem [shape: f32[2,1,8], index: 10, kind: input, shape index: {}]   ;;  %s2484_s11 = inlined_call_operand.vmem [shape: f32[2,8,8], index: 11, kind: input, shape index: {}]   ;;  %s2485_s12 = inlined_call_operand.vmem [shape: f32[2,8,8], index: 12, kind: input, shape index: {}]   ;;  %s2486_s13 = inlined_call_operand.vmem [shape: f32[2,1,8], index: 13, kind: input, shape index: {}]   ;;  %s2487_s14 = inlined_call_operand.vmem [shape: f32[2,8,8], index: 14, kind: input, shape index: {}]   ;;  %s2488_s15 = inlined_call_operand.vmem [shape: f32[2,8,8], index: 15, kind: input, shape index: {}]   ;;  %s2489_s16 = inlined_call_operand.vmem [shape: f32[2,1,8], index: 16, kind: input, shape index: {}]   ;;  %s2490_s17 = inlined_call_operand.vmem [shape: f32[2,8,16], index: 17, kind: input, shape index: {}]   ;;  %s2491_s18 = inlined_call_operand.vmem [shape: f32[1,16], index: 18, kind: input, shape index: {}]   ;;  %s2492_s19 = inlined_call_operand.hbm [shape: f32[4,24], index: 19, kind: output, shape index: {}]  }
   0x1   :  { %2495 = sst [smem:[#allocation5_spill]] %s2473_s0 }
   0x2   :  { %2496 = sst [smem:[#allocation6_spill]] %s2474_s1 }
   0x3   :  { %2497 = sst [smem:[#allocation7_spill]] %s2475_s2 }
   0x4   :  { %2498 = sst [smem:[#allocation8_spill]] %s2476_s3 }
   0x5   :  { %s2499_s20 = sld [smem:[#allocation7_spill]]  ;;  %v2098_v1 = vmov 2   ;;  %v2099_v2 = vmov 1  }
   0x6   :  { %2061 = vset.pattern.permute.xlu1 %v2098_v1  ;;  %2059 = vset.pattern.permute.xlu0 %v2099_v2 }
   0xb   :  { %v71_v0 = vld [vmem:[%s2499_s20] sm:$0xf] }
   0xc   :  { %163 = vperm.xlu1 %2061, %v71_v0   ;;  %153 = vperm.xlu0 %2059, %v71_v0  }
   0xd   :  { %24 = vsyncpa [#allocation3], 0  ;;  %s2500_s22 = sld [smem:[#allocation6_spill]]  ;;  %v2100_v4 = vmov 0   ;;  %v2101_v6 = vmov 0.0   ;;  %v181_v7 = vld [vmem:[%s2482_s9] sm:$0xff]  ;;  %v94_v19 = vlaneseq }
   0xe   :  { %1914 = vmatprep.subr.mxu0 %v2101_v6  ;;  %1919 = vmatprep.subr.mxu1 %v2101_v6  ;;  %v180_v8 = vld [vmem:[%s2481_s8] sm:$0xff]  ;;  %vm2102_vm0 = vmmov 0   ;;  %vm182_vm1 = vcmask 64512   ;;  %s2501_s29 = sld [smem:[#allocation8_spill]]  ;;  %vm813_vm2 = vcmask 257024   ;;  %vm825_vm3 = vcmask 261120  }
   0xf   :  { %1915 = vmatpush3.msra.mxu0 %v181_v7  ;;  %1916 = vmatprep.mubr.msk.f32.mxu0 %vm2102_vm0, %v2101_v6  ;;  %v2239_v11 = vld [vmem:[%s2485_s12] sm:$0xff]  ;;  %s2502_s25 = sld [smem:[#allocation5_spill]]  ;;  %v95_v20 = vshrl.u32 %v94_v19, 7  ;;  %vm1751_vm4 = vcmask 60416   ;;  %s2104_s28 = smov [#allocation2]   ;;  %vm1757_vm5 = vcmask 191552  }
  0x10   :  { %2062 = vset.pattern.permute.xlu1 %v2100_v4  ;;  %2060 = vset.pattern.permute.xlu0 %v2100_v4  ;;  %v337_v12 = vld [vmem:[%s2484_s11] sm:$0xff] }
  0x11   :  { %144 = vperm.xlu0 %2060, %v71_v0   ;;  %1920 = vmatpush3.msra.mxu1 %v180_v8  ;;  %v544_v18 = vld [vmem:[%s2487_s14] sm:$0xff]  ;;  %v120_v21 = vsub.s32 1, %v95_v20  ;;  %v96_v22 = vsub.s32 0, %v95_v20  ;;  %v168_v24 = vsub.s32 2, %v95_v20 }
  0x12   :  { %1921 = vmatprep.mubr.msk.f32.mxu1 %vm2102_vm0, %v2101_v6  ;;  %1924 = vmatprep.subr.mxu0 %v2239_v11  ;;  %v141_v23 = vld [vmem:[%s2479_s6] sm:$0x7] }
  0x13   :  { %v67_v3 = vld [vmem:[%s2500_s22] sm:$0xff]  ;;  %v68_v5 = vld [vmem:[%s2500_s22 + $0x8] sm:$0xff]  ;;  %v69_v10 = vld [vmem:[%s2500_s22 + $0x10] sm:$0xff]  ;;  %1932 = vmatprep.subr.mxu1 %v337_v12  ;;  %v159_v26 = vrot.slane %v141_v23, %v120_v21  ;;  %v150_v28 = vrot.slane %v141_v23, %v96_v22  ;;  %v169_v29 = vrot.slane %v141_v23, %v168_v24 }
  0x14   :  { %76 = vperm.xlu1 %2062, %v67_v3   ;;  %v2227_v9 = vld [vmem:[%s2501_s29] sm:$0xf]  ;;  %v70_v15 = vld [vmem:[%s2500_s22 + $0x18] sm:$0xff]  ;;  %s1765_s29 = sshll.u32 %s2104_s28, 4  ;;  %s1766_s29 = int_to_ptr.vmem [resolvable:$true] %s1765_s29 }
  0x15   :  { %81 = vperm.xlu0 %2060, %v68_v5   ;;  %1922 = vmatmul.mubr.msk.f32.vlgmr.msra.gmra.mxu1 %vm182_vm1, %v2227_v9  ;;  %v2247_v13 = vld [vmem:[%s2502_s25] sm:$0xff]  ;;  %v2253_v14 = vld [vmem:[%s2502_s25 + $0x8] sm:$0xff]  ;;  %v2265_v16 = vld [vmem:[%s2502_s25 + $0x10] sm:$0xff]  ;;  %1752 = vst.msk [vmem:[#allocation2] sm:$0xf] %vm1751_vm4, %v2227_v9  ;;  %s2076_s0 = scalar_lea.vmem %s1766_s29, 64  ;;  %p2081_p1 = scmp.lt.s32.totalorder %s1766_s29, %s1766_s29 }
  0x16   :  { %1933 = vmatpush3.msra.mxu1 %v337_v12  ;;  %1934 = vmatprep.mubr.msk.f32.mxu1 %vm182_vm1, %v2247_v13  ;;  %v2272_v17 = vld [vmem:[%s2502_s25 + $0x18] sm:$0xff]  ;;  %v73_v30 = vld [vmem:[%s2477_s4] sm:$0x3]  ;;  %p2077_p0 = scmp.ne.s32.totalorder %s1766_s29, %s2076_s0  ;;  %p2082_p2 = scmp.lt.s32.totalorder %s2076_s0, %s2076_s0 }
  0x17   :  { %1948 = vmatprep.subr.mxu1 %v544_v18  ;;  %v121_v35 = vrot.slane %v73_v30, %v120_v21  ;;  %v97_v36 = vrot.slane %v73_v30, %v96_v22  ;;  %v1774_v39 = vld [vmem:[%s2480_s7] ss:$0 sm:$0xff] }
  0x18   :  { %2063 = vset.pattern.permute.xlu1 %v2099_v2  ;;  %v1773_v46 = vld [vmem:[%s2478_s5] ss:$0 sm:$0xff]  ;;  %p2083_p3 = por %p2082_p2, %p2081_p1 }
  0x19   :  { %103 = vperm.xlu1 %2063, %v67_v3   ;;  %2065 = vset.pattern.permute.xlu0 %v2099_v2  ;;  %v545_v49 = vld [vmem:[%s2488_s15] sm:$0xff] }
  0x1a   :  { %111 = vperm.xlu0 %2065, %v69_v10   ;;  %1935 = vmatmul.mubr.msk.f32.vlgmr.msra.gmra.mxu1 %vm182_vm1, %v2253_v14  ;;  %v1786_v23 = vld [vmem:[%s2486_s13] ss:$0 sm:$0xff]  ;;  %p2084_p4 = pnand %p2083_p3, %p2077_p0 }
  0x1b   :  { %1937 = vmatprep.mubr.msk.f32.mxu1 %vm182_vm1, %v2265_v16  ;;  %1949 = vmatpush3.msra.mxu1 %v544_v18 }
  0x1c   :  { %1967 = vmatprep.subr.mxu1 %v2101_v6 }
  0x1d   :  { %107 = vperm.xlu1 %2063, %v68_v5  }
  0x1e   :  { %2067 = vset.pattern.permute.xlu0 %v2098_v1  ;;  %1938 = vmatmul.mubr.msk.f32.gmra.mxu1 %vm182_vm1, %v2272_v17 }
  0x1f   :  { %1950 = vmatprep.mubr.msk.f32.mxu1 %vm182_vm1, %v2247_v13 }
  0x21   :  { %2064 = vset.pattern.permute.xlu1 %v2100_v4 }
  0x22   :  { %86 = vperm.xlu1 %2064, %v69_v10   ;;  %1951 = vmatmul.mubr.msk.f32.vlgmr.msra.gmra.mxu1 %vm182_vm1, %v2253_v14 }
  0x23   :  { %1953 = vmatprep.mubr.msk.f32.mxu1 %vm182_vm1, %v2265_v16 }
  0x26   :  { %91 = vperm.xlu1 %2064, %v70_v15   ;;  %1954 = vmatmul.mubr.msk.f32.gmra.mxu1 %vm182_vm1, %v2272_v17 }
  0x27   :  { %1975 = vmatprep.mubr.msk.f32.mxu1 %vm2102_vm0, %v2101_v6 }
  0x2a   :  { %2066 = vset.pattern.permute.xlu1 %v2099_v2 }
  0x2b   :  { %115 = vperm.xlu1 %2066, %v70_v15  }
  0x87   :  { %v164_v25 = vpop.permute.xlu1 %163  ;;  %v154_v27 = vpop.permute.xlu0 %153 }
  0x88   :  { %v160_v31 = vmul.f32 %v159_v26, %v154_v27  ;;  %v170_v37 = vmul.f32 %v169_v29, %v164_v25 }
  0x8c   :  { %v145_v32 = vpop.permute.xlu0 %144 }
  0x8d   :  { %v151_v34 = vmul.f32 %v150_v28, %v145_v32 }
  0x8f   :  { %v77_v33 = vpop.permute.xlu1 %76  ;;  %v161_v38 = vadd.f32 %v160_v31, %v151_v34 }
  0x90   :  { %v82_v40 = vpop.permute.xlu0 %81  ;;  %v98_v43 = vmul.f32 %v97_v36, %v77_v33 }
  0x91   :  { %v171_v41 = vadd.f32 %v170_v37, %v161_v38  ;;  %v99_v48 = vmul.f32 %v97_v36, %v82_v40  ;;  %v1795_v37 = vld [vmem:[%s2489_s16] ss:$0 sm:$0xff] }
  0x93   :  { %v2299_v45 = vadd.f32 %v1774_v39, %v171_v41  ;;  %v1777_v39 = vld [vmem:[%s2483_s10] ss:$0 sm:$0xff] }
  0x94   :  { %v104_v42 = vpop.permute.xlu1 %103 }
  0x95   :  { %v122_v44 = vmul.f32 %v121_v35, %v104_v42  ;;  %1917 = vmatmul.mubr.msk.f32.vlgmr.msra.gmra.mxu0 %vm182_vm1, %v2299_v45  ;;  %v112_v53 = vpop.permute.xlu0 %111 }
  0x96   :  { %1925 = vmatpush3.msra.mxu0 %v2239_v11  ;;  %v124_v55 = vmul.f32 %v121_v35, %v112_v53 }
  0x97   :  { %v126_v47 = vadd.f32 %v122_v44, %v98_v43  ;;  %1940 = vmatprep.subr.mxu0 %v545_v49 }
  0x98   :  { %v108_v50 = vpop.permute.xlu1 %107 }
  0x99   :  { %v2309_v51 = vadd.f32 %v1773_v46, %v126_v47  ;;  %v123_v52 = vmul.f32 %v121_v35, %v108_v50  ;;  %v1809_v50 = vld [vmem:[%s2485_s12 + $0x8] sm:$0xff] }
  0x9b   :  { %v127_v54 = vadd.f32 %v123_v52, %v99_v48  ;;  %1926 = vmatprep.mubr.msk.f32.mxu0 %vm182_vm1, %v2309_v51 }
  0x9d   :  { %v2314_v56 = vadd.f32 %v1773_v46, %v127_v54  ;;  %v87_v57 = vpop.permute.xlu1 %86  ;;  %v1821_v54 = vld [vmem:[%s2488_s15 + $0x8] sm:$0xff] }
  0x9e   :  { %v100_v58 = vmul.f32 %v97_v36, %v87_v57 }
  0x9f   :  { %1927 = vmatmul.mubr.msk.f32.vlgmr.msra.gmra.mxu0 %vm182_vm1, %v2314_v56 }
  0xa0   :  { %v128_v59 = vadd.f32 %v124_v55, %v100_v58  ;;  %1941 = vmatpush3.msra.mxu0 %v545_v49 }
  0xa1   :  { %v92_v60 = vpop.permute.xlu1 %91  ;;  %1956 = vmatprep.subr.mxu0 %v2101_v6 }
  0xa2   :  { %v2319_v61 = vadd.f32 %v1773_v46, %v128_v59  ;;  %v101_v63 = vmul.f32 %v97_v36, %v92_v60 }
  0xa4   :  { %1929 = vmatprep.mubr.msk.f32.mxu0 %vm182_vm1, %v2319_v61 }
  0xa6   :  { %v116_v62 = vpop.permute.xlu1 %115 }
  0xa7   :  { %v125_v0 = vmul.f32 %v121_v35, %v116_v62 }
  0xa9   :  { %v129_v1 = vadd.f32 %v125_v0, %v101_v63 }
  0xab   :  { %v2323_v2 = vadd.f32 %v1773_v46, %v129_v1  ;;  %v1803_v1 = vld [vmem:[%s2482_s9 + $0x8] sm:$0xff] }
  0xad   :  { %1930 = vmatmul.mubr.msk.f32.gmra.mxu0 %vm182_vm1, %v2323_v2 }
  0xae   :  { %1942 = vmatprep.mubr.msk.f32.mxu0 %vm182_vm1, %v2309_v51 }
  0xb1   :  { %1943 = vmatmul.mubr.msk.f32.vlgmr.msra.gmra.mxu0 %vm182_vm1, %v2314_v56 }
  0xb2   :  { %1945 = vmatprep.mubr.msk.f32.mxu0 %vm182_vm1, %v2319_v61 }
  0xb5   :  { %1946 = vmatmul.mubr.msk.f32.gmra.mxu0 %vm182_vm1, %v2323_v2 }
  0xb6   :  { %1964 = vmatprep.mubr.msk.f32.mxu0 %vm2102_vm0, %v2101_v6 }
  0xd5   :  { %v325_v3 = vpop.f32.mrf.mxu1 }
  0xd7   :  { %v1923_v4 = vpop.f32.mrf.mxu1 }
  0xd8   :  { %v1820_v4 = vld [vmem:[%s2487_s14 + $0x8] sm:$0xff] }
  0xda   :  { %v1936_v8 = vpop.f32.mrf.mxu1 }
  0xdc   :  { %v514_v10 = vpop.f32.mrf.mxu1 }
  0xde   :  { %v1939_v11 = vpop.f32.mrf.mxu1 }
  0xe0   :  { %v524_v15 = vpop.f32.mrf.mxu1 }
  0xe2   :  { %v1952_v18 = vpop.f32.mrf.mxu1 }
  0xe4   :  { %v697_v21 = vpop.f32.mrf.mxu1 }
  0xe6   :  { %v1955_v28 = vpop.f32.mrf.mxu1 }
  0xe8   :  { %v707_v33 = vpop.f32.mrf.mxu1 }
 0x155   :  { %v252_v5 = vpop.f32.mrf.mxu0 }
 0x156   :  { %v326_v35 = vadd.f32 %v325_v3, %v252_v5  ;;  %v1808_v3 = vld [vmem:[%s2484_s11 + $0x8] sm:$0xff] }
 0x157   :  { %v1918_v7 = vpop.f32.mrf.mxu0 }
 0x158   :  { %v336_v47 = vadd.f32 %v1777_v39, %v326_v35 }
 0x15a   :  { %v727_v53 = vmul.f32 0.35355338, %v336_v47 }
 0x15f   :  { %v1928_v12 = vpop.f32.mrf.mxu0 }
 0x160   :  { %v520_v29 = vadd.f32 %v1936_v8, %v1928_v12 }
 0x161   :  { %v417_v19 = vpop.f32.mrf.mxu0 }
 0x162   :  { %v541_v36 = vadd.f32 %v1786_v23, %v520_v29  ;;  %v515_v40 = vadd.f32 %v514_v10, %v417_v19 }
 0x164   :  { %v540_v48 = vadd.f32 %v1786_v23, %v515_v40 }
 0x16d   :  { %v1931_v20 = vpop.f32.mrf.mxu0 }
 0x16e   :  { %v530_v22 = vadd.f32 %v1939_v11, %v1931_v20 }
 0x16f   :  { %v427_v24 = vpop.f32.mrf.mxu0 }
 0x170   :  { %v543_v25 = vadd.f32 %v1786_v23, %v530_v22  ;;  %v525_v26 = vadd.f32 %v524_v15, %v427_v24  ;;  %v1819_v22 = vld [vmem:[%s2486_s13 + $0x1] ss:$0 sm:$0xff] }
 0x171   :  { %v1944_v27 = vpop.f32.mrf.mxu0 }
 0x172   :  { %1957 = vmatpush3.xpose.msk.msra.mxu0 %vm182_vm1, %v543_v25  ;;  %v542_v31 = vadd.f32 %v1786_v23, %v525_v26  ;;  %v703_v41 = vadd.f32 %v1952_v18, %v1944_v27 }
 0x173   :  { %v612_v30 = vpop.f32.mrf.mxu0  ;;  %1958 = vmatprep.subr.mxu0 %v2101_v6 }
 0x174   :  { %v698_v44 = vadd.f32 %v697_v21, %v612_v30  ;;  %v724_v49 = vadd.f32 %v1795_v37, %v703_v41 }
 0x175   :  { %v1947_v32 = vpop.f32.mrf.mxu0 }
 0x176   :  { %v713_v34 = vadd.f32 %v1955_v28, %v1947_v32  ;;  %1959 = vmatpush3.xpose.msk.msra.mxu0 %vm182_vm1, %v542_v31  ;;  %v723_v52 = vadd.f32 %v1795_v37, %v698_v44 }
 0x177   :  { %v622_v38 = vpop.f32.mrf.mxu0  ;;  %1960 = vmatprep.subr.mxu0 %v2101_v6 }
 0x178   :  { %v726_v42 = vadd.f32 %v1795_v37, %v713_v34  ;;  %v708_v43 = vadd.f32 %v707_v33, %v622_v38  ;;  %v1807_v38 = vld [vmem:[%s2483_s10 + $0x1] ss:$0 sm:$0xff] }
 0x17a   :  { %v725_v46 = vadd.f32 %v1795_v37, %v708_v43  ;;  %1961 = vmatpush3.xpose.msk.msra.mxu0 %vm182_vm1, %v541_v36  ;;  %1968 = vmatpush3.msra.mxu1 %v726_v42  ;;  %v1831_v36 = vld [vmem:[%s2489_s16 + $0x1] ss:$0 sm:$0xff] }
 0x17b   :  { %1969 = vmatprep.subr.mxu1 %v2101_v6  ;;  %1962 = vmatprep.subr.mxu0 %v2101_v6 }
 0x17c   :  { %1970 = vmatpush3.msra.mxu1 %v725_v46 }
 0x17d   :  { %1971 = vmatprep.subr.mxu1 %v2101_v6 }
 0x17e   :  { %1963 = vmatpush3.xpose.msk.msra.mxu0 %vm182_vm1, %v540_v48  ;;  %1972 = vmatpush3.msra.mxu1 %v724_v49 }
 0x17f   :  { %1973 = vmatprep.subr.mxu1 %v2101_v6  ;;  %1988 = vmatprep.subr.mxu0 %v1809_v50 }
 0x180   :  { %1974 = vmatpush3.msra.mxu1 %v723_v52 }
 0x181   :  { %1965 = vmatmul.mubr.msk.f32.vlgmr.msra.gmra.mxu0 %vm182_vm1, %v727_v53  ;;  %1978 = vmatprep.subr.mxu1 %v2101_v6 }
 0x182   :  { %1990 = vmatprep.mubr.msk.f32.mxu0 %vm182_vm1, %v2309_v51  ;;  %1989 = vmatpush3.msra.mxu0 %v1809_v50 }
 0x183   :  { %2004 = vmatprep.subr.mxu0 %v1821_v54 }
 0x185   :  { %1991 = vmatmul.mubr.msk.f32.vlgmr.msra.gmra.mxu0 %vm182_vm1, %v2314_v56 }
 0x186   :  { %1993 = vmatprep.mubr.msk.f32.mxu0 %vm182_vm1, %v2319_v61  ;;  %2005 = vmatpush3.msra.mxu0 %v1821_v54 }
 0x187   :  { %2020 = vmatprep.subr.mxu0 %v2101_v6 }
 0x189   :  { %1994 = vmatmul.mubr.msk.f32.gmra.mxu0 %vm182_vm1, %v2323_v2 }
 0x18a   :  { %2006 = vmatprep.mubr.msk.f32.mxu0 %vm182_vm1, %v2309_v51 }
 0x18d   :  { %2007 = vmatmul.mubr.msk.f32.vlgmr.msra.gmra.mxu0 %vm182_vm1, %v2314_v56 }
 0x18e   :  { %2009 = vmatprep.mubr.msk.f32.mxu0 %vm182_vm1, %v2319_v61 }
 0x191   :  { %2010 = vmatmul.mubr.msk.f32.gmra.mxu0 %vm182_vm1, %v2323_v2  ;;  %v1802_v2 = vld [vmem:[%s2481_s8 + $0x8] sm:$0xff] }
 0x192   :  { %2028 = vmatprep.mubr.msk.f32.mxu0 %vm2102_vm0, %v2101_v6 }
 0x241   :  { %v809_v55 = vpop.f32.mrf.mxu0 }
 0x242   :  { %v814_v57 = vsel %vm813_vm2, %v809_v55, -inf }
 0x243   :  { %815 = vmax.xlane.f32.xlu0 %v814_v57  ;;  %v1966_v58 = vpop.f32.mrf.mxu0 }
 0x2cc   :  { %v816_v59 = vpop.xlane.xlu0 %815 }
 0x2cd   :  { %v817_v51 = vsub.f32 %v809_v55, %v816_v59 }
 0x2cf   :  { %v818_v60 = vmul.f32 1.442695, %v817_v51 }
 0x2d1   :  { %2068 = vpow2.f32 %v818_v60 }
 0x2de   :  { %v2069_v56 = vpop.eup %2068 }
 0x2df   :  { %v820_v62 = vsel %vm813_vm2, %v2069_v56, 0.0 }
 0x2e0   :  { %821 = vadd.xlane.f32.xlu1 %v820_v62 }
 0x369   :  { %v822_v61 = vpop.xlane.xlu1 %821 }
 0x36a   :  { %2070 = vrcp.f32 %v822_v61  ;;  %v1838_v61 = vld [vmem:[%s2490_s17 + $0x8] sm:$0xff] }
 0x377   :  { %v2071_v63 = vpop.eup %2070 }
 0x378   :  { %v824_v0 = vmul.f32 %v2071_v63, %v2069_v56  ;;  %v899_v63 = vld [vmem:[%s2490_s17] sm:$0xff]  ;;  %s2103_s17 = smov 8  }
 0x37a   :  { %1976 = vmatmul.mubr.msk.f32.vlgmr.msra.gmra.mxu1 %vm825_vm3, %v824_v0 }
 0x37b   :  { %1979 = vmatpush3.msra.mxu1 %v1803_v1  ;;  %1980 = vmatprep.mubr.msk.f32.mxu1 %vm2102_vm0, %v2101_v6 }
 0x37c   :  { %1983 = vmatprep.subr.mxu1 %v2101_v6 }
 0x37e   :  { %1981 = vmatmul.mubr.msk.f32.vlgmr.msra.gmra.mxu1 %vm182_vm1, %v2299_v45  ;;  %v1992_v45 = vpop.f32.mrf.mxu0 }
 0x37f   :  { %1984 = vmatpush3.msra.mxu1 %v1802_v2  ;;  %1985 = vmatprep.mubr.msk.f32.mxu1 %vm2102_vm0, %v2101_v6 }
 0x380   :  { %1996 = vmatprep.subr.mxu1 %v1808_v3  ;;  %v1123_v7 = vpop.f32.mrf.mxu0 }
 0x382   :  { %1986 = vmatmul.mubr.msk.f32.vlgmr.msra.gmra.mxu1 %vm182_vm1, %v2227_v9  ;;  %v1995_v11 = vpop.f32.mrf.mxu0 }
 0x383   :  { %1997 = vmatpush3.msra.mxu1 %v1808_v3  ;;  %1998 = vmatprep.mubr.msk.f32.mxu1 %vm182_vm1, %v2247_v13 }
 0x384   :  { %2012 = vmatprep.subr.mxu1 %v1820_v4  ;;  %v1133_v15 = vpop.f32.mrf.mxu0 }
 0x386   :  { %1999 = vmatmul.mubr.msk.f32.vlgmr.msra.gmra.mxu1 %vm182_vm1, %v2253_v14  ;;  %v2008_v19 = vpop.f32.mrf.mxu0 }
 0x387   :  { %2001 = vmatprep.mubr.msk.f32.mxu1 %vm182_vm1, %v2265_v16  ;;  %2013 = vmatpush3.msra.mxu1 %v1820_v4 }
 0x388   :  { %2031 = vmatprep.subr.mxu1 %v2101_v6 }
 0x38a   :  { %2002 = vmatmul.mubr.msk.f32.gmra.mxu1 %vm182_vm1, %v2272_v17 }
 0x38b   :  { %2014 = vmatprep.mubr.msk.f32.mxu1 %vm182_vm1, %v2247_v13 }
 0x38e   :  { %2015 = vmatmul.mubr.msk.f32.vlgmr.msra.gmra.mxu1 %vm182_vm1, %v2253_v14 }
 0x38f   :  { %2017 = vmatprep.mubr.msk.f32.mxu1 %vm182_vm1, %v2265_v16 }
 0x392   :  { %2018 = vmatmul.mubr.msk.f32.gmra.mxu1 %vm182_vm1, %v2272_v17  ;;  %v1309_v17 = vpop.f32.mrf.mxu0 }
 0x393   :  { %2039 = vmatprep.mubr.msk.f32.mxu1 %vm2102_vm0, %v2101_v6 }
 0x394   :  { %v2011_v27 = vpop.f32.mrf.mxu0 }
 0x396   :  { %v1319_v33 = vpop.f32.mrf.mxu0 }
 0x43a   :  { %v2426_v5 = vpop.f32.mrf.mxu1 }
 0x43c   :  { %v1977_v8 = vpop.f32.mrf.mxu1 }
 0x43e   :  { %v970_v10 = vpop.f32.mrf.mxu1 }
 0x440   :  { %v1982_v13 = vpop.f32.mrf.mxu1 }
 0x442   :  { %v1040_v12 = vpop.f32.mrf.mxu1 }
 0x443   :  { %v1041_v34 = vadd.f32 %v1040_v12, %v970_v10 }
 0x444   :  { %v1987_v14 = vpop.f32.mrf.mxu1 }
 0x445   :  { %v1052_v46 = vadd.f32 %v1807_v38, %v1041_v34 }
 0x446   :  { %v2000_v18 = vpop.f32.mrf.mxu1 }
 0x447   :  { %v1214_v28 = vadd.f32 %v2000_v18, %v1992_v45  ;;  %v1425_v50 = vmul.f32 0.35355338, %v1052_v46  ;;  %v1841_v45 = vld [vmem:[%s2491_s18] ss:$0 sm:$0xff] }
 0x448   :  { %v1208_v16 = vpop.f32.mrf.mxu1 }
 0x449   :  { %v1236_v35 = vadd.f32 %v1819_v22, %v1214_v28  ;;  %v1209_v39 = vadd.f32 %v1208_v16, %v1123_v7 }
 0x44a   :  { %v2003_v20 = vpop.f32.mrf.mxu1 }
 0x44b   :  { %v1224_v21 = vadd.f32 %v2003_v20, %v1995_v11  ;;  %v1235_v47 = vadd.f32 %v1819_v22, %v1209_v39 }
 0x44c   :  { %v1218_v23 = vpop.f32.mrf.mxu1 }
 0x44d   :  { %v1238_v24 = vadd.f32 %v1819_v22, %v1224_v21  ;;  %v1219_v25 = vadd.f32 %v1218_v23, %v1133_v15 }
 0x44e   :  { %v2016_v26 = vpop.f32.mrf.mxu1 }
 0x44f   :  { %2021 = vmatpush3.xpose.msk.msra.mxu0 %vm182_vm1, %v1238_v24  ;;  %v1237_v30 = vadd.f32 %v1819_v22, %v1219_v25  ;;  %v1400_v40 = vadd.f32 %v2016_v26, %v2008_v19 }
 0x450   :  { %v1394_v29 = vpop.f32.mrf.mxu1  ;;  %2022 = vmatprep.subr.mxu0 %v2101_v6 }
 0x451   :  { %v1395_v43 = vadd.f32 %v1394_v29, %v1309_v17  ;;  %v1422_v48 = vadd.f32 %v1831_v36, %v1400_v40 }
 0x452   :  { %v2019_v31 = vpop.f32.mrf.mxu1 }
 0x453   :  { %v1410_v32 = vadd.f32 %v2019_v31, %v2011_v27  ;;  %2023 = vmatpush3.xpose.msk.msra.mxu0 %vm182_vm1, %v1237_v30  ;;  %v1421_v49 = vadd.f32 %v1831_v36, %v1395_v43 }
 0x454   :  { %v1404_v37 = vpop.f32.mrf.mxu1  ;;  %2024 = vmatprep.subr.mxu0 %v2101_v6 }
 0x455   :  { %v1424_v41 = vadd.f32 %v1831_v36, %v1410_v32  ;;  %v1405_v42 = vadd.f32 %v1404_v37, %v1319_v33 }
 0x457   :  { %v1423_v44 = vadd.f32 %v1831_v36, %v1405_v42  ;;  %2025 = vmatpush3.xpose.msk.msra.mxu0 %vm182_vm1, %v1236_v35  ;;  %2032 = vmatpush3.msra.mxu1 %v1424_v41 }
 0x458   :  { %2033 = vmatprep.subr.mxu1 %v2101_v6  ;;  %2026 = vmatprep.subr.mxu0 %v2101_v6 }
 0x459   :  { %2034 = vmatpush3.msra.mxu1 %v1423_v44 }
 0x45a   :  { %2035 = vmatprep.subr.mxu1 %v2101_v6 }
 0x45b   :  { %2027 = vmatpush3.xpose.msk.msra.mxu0 %vm182_vm1, %v1235_v47  ;;  %2036 = vmatpush3.msra.mxu1 %v1422_v48 }
 0x45c   :  { %2037 = vmatprep.subr.mxu1 %v2101_v6 }
 0x45d   :  { %2038 = vmatpush3.msra.mxu1 %v1421_v49 }
 0x45e   :  { %2029 = vmatmul.mubr.msk.f32.vlgmr.msra.gmra.mxu0 %vm182_vm1, %v1425_v50  ;;  %2042 = vmatprep.subr.mxu1 %v2101_v6 }
 0x51e   :  { %v1507_v52 = vpop.f32.mrf.mxu0 }
 0x51f   :  { %v1511_v53 = vsel %vm813_vm2, %v1507_v52, -inf }
 0x520   :  { %1512 = vmax.xlane.f32.xlu0 %v1511_v53  ;;  %v2030_v54 = vpop.f32.mrf.mxu0 }
 0x5a9   :  { %v1513_v55 = vpop.xlane.xlu0 %1512 }
 0x5aa   :  { %v1514_v57 = vsub.f32 %v1507_v52, %v1513_v55 }
 0x5ac   :  { %v1515_v58 = vmul.f32 1.442695, %v1514_v57 }
 0x5ae   :  { %2072 = vpow2.f32 %v1515_v58 }
 0x5bb   :  { %v2073_v59 = vpop.eup %2072 }
 0x5bc   :  { %v1517_v51 = vsel %vm813_vm2, %v2073_v59, 0.0 }
 0x5bd   :  { %1518 = vadd.xlane.f32.xlu0 %v1517_v51 }
 0x646   :  { %v1519_v60 = vpop.xlane.xlu0 %1518 }
 0x647   :  { %2074 = vrcp.f32 %v1519_v60 }
 0x654   :  { %v2075_v56 = vpop.eup %2074 }
 0x655   :  { %v1521_v62 = vmul.f32 %v2075_v56, %v2073_v59 }
 0x657   :  { %2040 = vmatmul.mubr.msk.f32.vlgmr.msra.gmra.mxu1 %vm825_vm3, %v1521_v62 }
 0x658   :  { %2043 = vmatpush3.msra.mxu1 %v1838_v61  ;;  %2044 = vmatprep.mubr.msk.f32.mxu1 %vm2102_vm0, %v2101_v6 }
 0x659   :  { %2047 = vmatprep.subr.mxu1 %v2101_v6 }
 0x717   :  { %v1591_v0 = vpop.f32.mrf.mxu1 }
 0x718   :  { %2045 = vmatmul.mubr.msk.f32.vlgmr.msra.gmra.mxu1 %vm182_vm1, %v1591_v0 }
 0x719   :  { %2048 = vmatpush3.msra.mxu1 %v899_v63  ;;  %v2041_v1 = vpop.f32.mrf.mxu1  ;;  %2049 = vmatprep.mubr.msk.f32.mxu1 %vm2102_vm0, %v2101_v6 }
 0x71c   :  { %2050 = vmatmul.mubr.msk.f32.vlgmr.msra.gmra.mxu1 %vm182_vm1, %v2426_v5 }
 0x7d8   :  { %v1666_v2 = vpop.f32.mrf.mxu1 }
 0x7da   :  { %v2046_v3 = vpop.f32.mrf.mxu1 }
 0x7dc   :  { %v1739_v4 = vpop.f32.mrf.mxu1 }
 0x7dd   :  { %v1740_v7 = vadd.f32 %v1739_v4, %v1666_v2 }
 0x7de   :  { %v2051_v8 = vpop.f32.mrf.mxu1 }
 0x7df   :  { %v1750_v10 = vadd.f32 %v1841_v45, %v1740_v7 }
 0x7e1   :  { %1754 = vrot.lane.b32.xlu1 %v1750_v10, %s2103_s17 }
 0x853   :  { %v1755_v6 = vpop.permute.xlu1 %1754 }
 0x854   :  { %1758 = vst.msk [vmem:[#allocation2] sm:$0xf] %vm1757_vm5, %v1755_v6 }
 0x855   :  { %2087 = shalt.err (!%p2084_p4)
}
 0x856   :  { %1768 = dma.vmem_to_hbm [thread:$0]  %s1766_s29, 64, %s2492_s19, [#allocation3]  }
 0x857   :  { %2096 = dma.done.wait [#allocation3], 64  }
 0x858   :  { %2097 = vsyncadd [#allocation3], 4294967232 }
 0x859   :  { %1772 = vsyncpa [#allocation3], 1 }

</bundles_post_ra>
